<compile_context>
chip_gen: v7x
topology: tpu7x:2x2x1
jax: 0.10.0
libtpu: 0.0.40
codegen_flags: <defaults>
</compile_context>

<pallas_src>
import functools

import numpy as np

import jax
import jax.numpy as jnp
from jax.experimental import pallas as pl
from jax.experimental.pallas import tpu as pltpu

KSIZE = 5
PAD = 2


def _banded_weights(w_hwio, width):
    """Fold HWIO 5x5 conv weights into 5 banded matmul matrices.

    w_hwio: (5, 5, Cin, Cout)
    returns (5, (width+4)*Cin, width*Cout) with
        out[dy, x*Cin + ci, ox*Cout + co] = w[dy, x - ox, ci, co] if 0 <= x-ox < 5
                                            else 0
    so that for a zero-padded lane-packed activation row of shape
    ((width+4)*Cin,) the product `row @ out[dy]` is that row's dy-tap
    contribution to the conv output row, lane-packed as (width*Cout,).
    Pure gather + mask => folded weights are bit-exact copies of the originals.
    """
    k, _, _, _ = w_hwio.shape
    wp = width + 2 * PAD
    x = np.arange(wp)[:, None]
    ox = np.arange(width)[None, :]
    dx = x - ox                                     # (wp, width)
    valid = (dx >= 0) & (dx < k)
    dx_c = np.clip(dx, 0, k - 1)
    g = w_hwio[:, dx_c]                             # (k, wp, width, cin, cout)
    g = jnp.where(jnp.asarray(valid)[None, :, :, None, None], g, 0.0)
    g = jnp.transpose(g, (0, 1, 3, 2, 4))           # (k, wp, cin, width, cout)
    return g.reshape(k, g.shape[1] * g.shape[2], width * w_hwio.shape[3])


def _double_conv_kernel(x_ref, w1_ref, b1_ref, w2_ref, b2_ref, o_ref,
                        xpad_ref, hpad_ref, *,
                        H, W, Cin, Cmid, Cout, use_bf16_matmul):
    """Fused DoubleConv for one batch image.

    x_ref : (1, H, W*Cin)            lane-packed input tile
    w1_ref: (5, (W+4)*Cin, W*Cmid)   banded conv1 weights (one matrix per dy)
    b1_ref: (1, W*Cmid)              pre-tiled bias
    w2_ref: (5, (W+4)*Cmid, W*Cout)  banded conv2 weights
    b2_ref: (1, W*Cout)              pre-tiled bias
    o_ref : (1, H, W*Cout)           lane-packed output tile
    xpad_ref: VMEM (H+4, (W+4)*Cin)  lane-packed zero-bordered input scratch
    hpad_ref: VMEM (H+4, (W+4)*Cmid) lane-packed zero-bordered mid scratch
    """
    Hp = H + 2 * PAD

    def zero_border(pad_ref, c):
        # Interior is fully overwritten below; only the halo needs zeros.
        wp_lanes = (W + 2 * PAD) * c
        pad_ref[0:PAD, :] = jnp.zeros((PAD, wp_lanes), jnp.float32)
        pad_ref[PAD + H:Hp, :] = jnp.zeros((PAD, wp_lanes), jnp.float32)
        pad_ref[PAD:PAD + H, 0:PAD * c] = jnp.zeros((H, PAD * c), jnp.float32)
        pad_ref[PAD:PAD + H, (PAD + W) * c:(PAD + W) * c + PAD * c] = (
            jnp.zeros((H, PAD * c), jnp.float32))

    def conv_relu(pad_ref, wb_ref, bt_ref, n_lanes):
        # 5 lane-dense matmuls (one per kernel row dy), accumulated in f32:
        #   (H, (W+4)*cin) @ ((W+4)*cin, W*cout)  ->  (H, W*cout)
        acc = jnp.zeros((H, n_lanes), jnp.float32)
        for dy in range(KSIZE):
            lhs = pad_ref[dy:dy + H, :]
            if use_bf16_matmul:        # weights were pre-cast once in wrapper
                lhs = lhs.astype(jnp.bfloat16)
            acc = acc + jnp.dot(lhs, wb_ref[dy],
                                preferred_element_type=jnp.float32)
        return jnp.maximum(acc + bt_ref[...], 0.0)

    # ---- conv1 + ReLU: halo handled in a lane-packed VMEM scratch.
    zero_border(xpad_ref, Cin)
    xpad_ref[PAD:PAD + H, PAD * Cin:(PAD + W) * Cin] = x_ref[0]
    h = conv_relu(xpad_ref, w1_ref, b1_ref, W * Cmid)       # (H, W*Cmid) f32

    # ---- conv2 + ReLU: intermediate stays in VMEM, never written to HBM.
    zero_border(hpad_ref, Cmid)
    hpad_ref[PAD:PAD + H, PAD * Cmid:(PAD + W) * Cmid] = h
    y = conv_relu(hpad_ref, w2_ref, b2_ref, W * Cout)        # (H, W*Cout) f32

    # ---- lane-dense store: trailing dim W*Cout (= 128 here, unmasked vst).
    o_ref[0] = y.astype(o_ref.dtype)


def _fused_double_conv_packed(x_nhwc, w1, b1, w2, b2, *, use_bf16_matmul=False):
    """x_nhwc: (N, H, W, Cin) f32; w*: (5,5,Ci,Co) HWIO; b*: (Co,)."""
    N, H, W, Cin = x_nhwc.shape
    Cmid = w1.shape[-1]
    Cout = w2.shape[-1]
    Wp = W + 2 * PAD

    x_packed = x_nhwc.reshape(N, H, W * Cin)           # lane-packed rows
    w1b = _banded_weights(w1, W)                        # (5, Wp*Cin,  W*Cmid)
    w2b = _banded_weights(w2, W)                        # (5, Wp*Cmid, W*Cout)
    b1t = jnp.tile(b1, W).reshape(1, W * Cmid)
    b2t = jnp.tile(b2, W).reshape(1, W * Cout)
    if use_bf16_matmul:                                 # cast once, not per step
        w1b = w1b.astype(jnp.bfloat16)
        w2b = w2b.astype(jnp.bfloat16)

    kernel = functools.partial(
        _double_conv_kernel, H=H, W=W, Cin=Cin, Cmid=Cmid, Cout=Cout,
        use_bf16_matmul=use_bf16_matmul)

    flops = 2 * N * KSIZE * H * (Wp * Cin * W * Cmid + Wp * Cmid * W * Cout)
    bytes_accessed = 4 * (x_packed.size + w1b.size + w2b.size
                          + b1t.size + b2t.size + N * H * W * Cout)

    y_packed = pl.pallas_call(
        kernel,
        out_shape=jax.ShapeDtypeStruct((N, H, W * Cout), jnp.float32),
        grid_spec=pltpu.PrefetchScalarGridSpec(
            num_scalar_prefetch=0,
            grid=(N,),
            in_specs=[
                pl.BlockSpec((1, H, W * Cin), lambda n: (n, 0, 0)),
                pl.BlockSpec((KSIZE, Wp * Cin, W * Cmid), lambda n: (0, 0, 0)),
                pl.BlockSpec((1, W * Cmid), lambda n: (0, 0)),
                pl.BlockSpec((KSIZE, Wp * Cmid, W * Cout), lambda n: (0, 0, 0)),
                pl.BlockSpec((1, W * Cout), lambda n: (0, 0)),
            ],
            out_specs=pl.BlockSpec((1, H, W * Cout), lambda n: (n, 0, 0)),
            scratch_shapes=[
                pltpu.VMEM((H + 2 * PAD, Wp * Cin), jnp.float32),
                pltpu.VMEM((H + 2 * PAD, Wp * Cmid), jnp.float32),
            ],
        ),
        compiler_params=pltpu.CompilerParams(
            dimension_semantics=("parallel",)),
        cost_estimate=pl.CostEstimate(
            flops=flops, transcendentals=0, bytes_accessed=bytes_accessed),
    )(x_packed, w1b, b1t, w2b, b2t)

    return y_packed.reshape(N, H, W, Cout)


def init_double_conv_params(key, in_channels, out_channels, mid_channels=None):
    """Deterministic synthetic init (shapes match nn.Conv2d(k=5, pad=2))."""
    if not mid_channels:
        mid_channels = out_channels
    k1, k2, k3, k4 = jax.random.split(key, 4)
    # weights stored HWIO (KH, KW, Cin, Cout)
    w1 = jax.random.normal(k1, (KSIZE, KSIZE, in_channels, mid_channels),
                           jnp.float32) * 0.1
    b1 = jax.random.normal(k2, (mid_channels,), jnp.float32) * 0.1
    w2 = jax.random.normal(k3, (KSIZE, KSIZE, mid_channels, out_channels),
                           jnp.float32) * 0.1
    b2 = jax.random.normal(k4, (out_channels,), jnp.float32) * 0.1
    return (w1, b1, w2, b2)


def double_conv(x_nchw, params, *, use_bf16_matmul=False):
    """Forward pass of DoubleConv. Input/output are NCHW like PyTorch."""
    w1, b1, w2, b2 = params
    x = jnp.transpose(x_nchw, (0, 2, 3, 1))             # NCHW -> NHWC (tiny)
    y = _fused_double_conv_packed(x, w1, b1, w2, b2,
                                  use_bf16_matmul=use_bf16_matmul)
    return jnp.transpose(y, (0, 3, 1, 2))               # NHWC -> NCHW


def _reference_double_conv(x_nchw, params):
    """Pure-JAX reference (lax.conv, exact f32) for the correctness check."""
    w1, b1, w2, b2 = params

    def conv(x, w, b):
        y = jax.lax.conv_general_dilated(
            x, w, window_strides=(1, 1), padding="SAME",
            dimension_numbers=("NCHW", "HWIO", "NCHW"),
            precision=jax.lax.Precision.HIGHEST)
        return jnp.maximum(y + b[None, :, None, None], 0.0)

    return conv(conv(x_nchw, w1, b1), w2, b2)


if __name__ == "__main__":
    key = jax.random.PRNGKey(0)
    kx, kp = jax.random.split(key)

    N, C_in, H, W = 2, 4, 16, 16
    C_out = 8

    x = jax.random.normal(kx, (N, C_in, H, W), jnp.float32)
    params = init_double_conv_params(kp, C_in, C_out)

    y = jax.block_until_ready(double_conv(x, params))

    y_ref = _reference_double_conv(x, params)
    assert y.shape == (N, C_out, H, W)
    assert jnp.allclose(y, y_ref, atol=1e-4, rtol=1e-4), (
        float(jnp.max(jnp.abs(y - y_ref))))

    print("KERNEL_OK")
</pallas_src>

<mosaic_0001>
module attributes {stable_mosaic.version = 11 : i64} {
  func.func @_double_conv_kernel(%arg0: i32, %arg1: memref<1x16x64xf32, #tpu.memory_space<vmem>>, %arg2: memref<5x80x128xf32, #tpu.memory_space<vmem>>, %arg3: memref<1x128xf32, #tpu.memory_space<vmem>>, %arg4: memref<5x160x128xf32, #tpu.memory_space<vmem>>, %arg5: memref<1x128xf32, #tpu.memory_space<vmem>>, %arg6: memref<1x16x128xf32, #tpu.memory_space<vmem>>, %arg7: memref<20x80xf32, #tpu.memory_space<vmem>>, %arg8: memref<20x160xf32, #tpu.memory_space<vmem>>) attributes {dimension_semantics = [#tpu.dimension_semantics<parallel>], iteration_bounds = array<i64: 2>, scalar_prefetch = 0 : i64, scratch_operands = 2 : i64, tpu.core_type = #tpu.core_type<tc>, window_params = [{transform_indices = @transform_0, window_bounds = array<i64: 1, 16, 64>}, {pipeline_mode = #tpu.pipeline_mode<synchronous>, transform_indices = @transform_1, window_bounds = array<i64: 5, 80, 128>}, {pipeline_mode = #tpu.pipeline_mode<synchronous>, transform_indices = @transform_2, window_bounds = array<i64: 1, 128>}, {pipeline_mode = #tpu.pipeline_mode<synchronous>, transform_indices = @transform_3, window_bounds = array<i64: 5, 160, 128>}, {pipeline_mode = #tpu.pipeline_mode<synchronous>, transform_indices = @transform_4, window_bounds = array<i64: 1, 128>}, {transform_indices = @transform_5, window_bounds = array<i64: 1, 16, 128>}]} {
    %cst = arith.constant 0.000000e+00 : f32
    %0 = vector.broadcast %cst : f32 to vector<2x80xf32>
    %c0 = arith.constant 0 : index
    %c0_0 = arith.constant 0 : index
    %1 = vector.load %arg7[%c0, %c0_0] : memref<20x80xf32, #tpu.memory_space<vmem>>, vector<2x80xf32>
    tpu.vector_store %arg7[%c0, %c0_0], %0 {strides = array<i32>} : memref<20x80xf32, #tpu.memory_space<vmem>>, vector<2x80xf32>,
    %cst_1 = arith.constant 0.000000e+00 : f32
    %2 = vector.broadcast %cst_1 : f32 to vector<2x80xf32>
    %c18 = arith.constant 18 : index
    %c0_2 = arith.constant 0 : index
    %3 = vector.load %arg7[%c18, %c0_2] : memref<20x80xf32, #tpu.memory_space<vmem>>, vector<2x80xf32>
    tpu.vector_store %arg7[%c18, %c0_2], %2 {strides = array<i32>} : memref<20x80xf32, #tpu.memory_space<vmem>>, vector<2x80xf32>,
    %cst_3 = arith.constant 0.000000e+00 : f32
    %4 = vector.broadcast %cst_3 : f32 to vector<16x8xf32>
    %c2 = arith.constant 2 : index
    %c0_4 = arith.constant 0 : index
    %5 = vector.load %arg7[%c2, %c0_4] : memref<20x80xf32, #tpu.memory_space<vmem>>, vector<16x8xf32>
    tpu.vector_store %arg7[%c2, %c0_4], %4 {strides = array<i32>} : memref<20x80xf32, #tpu.memory_space<vmem>>, vector<16x8xf32>,
    %cst_5 = arith.constant 0.000000e+00 : f32
    %6 = vector.broadcast %cst_5 : f32 to vector<16x8xf32>
    %c2_6 = arith.constant 2 : index
    %c72 = arith.constant 72 : index
    %7 = vector.load %arg7[%c2_6, %c72] : memref<20x80xf32, #tpu.memory_space<vmem>>, vector<16x8xf32>
    tpu.vector_store %arg7[%c2_6, %c72], %6 {strides = array<i32>} : memref<20x80xf32, #tpu.memory_space<vmem>>, vector<16x8xf32>,
    %c0_7 = arith.constant 0 : index
    %c0_8 = arith.constant 0 : index
    %c0_9 = arith.constant 0 : index
    %8 = vector.load %arg1[%c0_7, %c0_8, %c0_9] : memref<1x16x64xf32, #tpu.memory_space<vmem>>, vector<1x16x64xf32>
    %9 = vector.shape_cast %8 : vector<1x16x64xf32> to vector<16x64xf32>
    %c2_10 = arith.constant 2 : index
    %c8 = arith.constant 8 : index
    %10 = vector.load %arg7[%c2_10, %c8] : memref<20x80xf32, #tpu.memory_space<vmem>>, vector<16x64xf32>
    tpu.vector_store %arg7[%c2_10, %c8], %9 {strides = array<i32>} : memref<20x80xf32, #tpu.memory_space<vmem>>, vector<16x64xf32>,
    %cst_11 = arith.constant 0.000000e+00 : f32
    %11 = vector.broadcast %cst_11 : f32 to vector<16x128xf32>
    %c0_12 = arith.constant 0 : index
    %c0_13 = arith.constant 0 : index
    %12 = vector.load %arg7[%c0_12, %c0_13] : memref<20x80xf32, #tpu.memory_space<vmem>>, vector<16x80xf32>
    %c0_14 = arith.constant 0 : index
    %c0_15 = arith.constant 0 : index
    %c0_16 = arith.constant 0 : index
    %13 = vector.load %arg2[%c0_14, %c0_15, %c0_16] : memref<5x80x128xf32, #tpu.memory_space<vmem>>, vector<1x80x128xf32>
    %14 = vector.shape_cast %13 : vector<1x80x128xf32> to vector<80x128xf32>
    %cst_17 = arith.constant dense<0.000000e+00> : vector<16x128xf32>
    %15 = tpu.matmul %12, %14, %cst_17 {dimension_numbers = #tpu.dot_dimension_numbers<[1], [0], [0], [1], [0, 0, 1, 1], [], []>} : vector<16x80xf32>, vector<80x128xf32>, vector<16x128xf32> -> vector<16x128xf32>
    %16 = arith.addf %11, %15 : vector<16x128xf32>
    %c1 = arith.constant 1 : index
    %c0_18 = arith.constant 0 : index
    %17 = vector.load %arg7[%c1, %c0_18] : memref<20x80xf32, #tpu.memory_space<vmem>>, vector<16x80xf32>
    %c1_19 = arith.constant 1 : index
    %c0_20 = arith.constant 0 : index
    %c0_21 = arith.constant 0 : index
    %18 = vector.load %arg2[%c1_19, %c0_20, %c0_21] : memref<5x80x128xf32, #tpu.memory_space<vmem>>, vector<1x80x128xf32>
    %19 = vector.shape_cast %18 : vector<1x80x128xf32> to vector<80x128xf32>
    %cst_22 = arith.constant dense<0.000000e+00> : vector<16x128xf32>
    %20 = tpu.matmul %17, %19, %cst_22 {dimension_numbers = #tpu.dot_dimension_numbers<[1], [0], [0], [1], [0, 0, 1, 1], [], []>} : vector<16x80xf32>, vector<80x128xf32>, vector<16x128xf32> -> vector<16x128xf32>
    %21 = arith.addf %16, %20 : vector<16x128xf32>
    %c2_23 = arith.constant 2 : index
    %c0_24 = arith.constant 0 : index
    %22 = vector.load %arg7[%c2_23, %c0_24] : memref<20x80xf32, #tpu.memory_space<vmem>>, vector<16x80xf32>
    %c2_25 = arith.constant 2 : index
    %c0_26 = arith.constant 0 : index
    %c0_27 = arith.constant 0 : index
    %23 = vector.load %arg2[%c2_25, %c0_26, %c0_27] : memref<5x80x128xf32, #tpu.memory_space<vmem>>, vector<1x80x128xf32>
    %24 = vector.shape_cast %23 : vector<1x80x128xf32> to vector<80x128xf32>
    %cst_28 = arith.constant dense<0.000000e+00> : vector<16x128xf32>
    %25 = tpu.matmul %22, %24, %cst_28 {dimension_numbers = #tpu.dot_dimension_numbers<[1], [0], [0], [1], [0, 0, 1, 1], [], []>} : vector<16x80xf32>, vector<80x128xf32>, vector<16x128xf32> -> vector<16x128xf32>
    %26 = arith.addf %21, %25 : vector<16x128xf32>
    %c3 = arith.constant 3 : index
    %c0_29 = arith.constant 0 : index
    %27 = vector.load %arg7[%c3, %c0_29] : memref<20x80xf32, #tpu.memory_space<vmem>>, vector<16x80xf32>
    %c3_30 = arith.constant 3 : index
    %c0_31 = arith.constant 0 : index
    %c0_32 = arith.constant 0 : index
    %28 = vector.load %arg2[%c3_30, %c0_31, %c0_32] : memref<5x80x128xf32, #tpu.memory_space<vmem>>, vector<1x80x128xf32>
    %29 = vector.shape_cast %28 : vector<1x80x128xf32> to vector<80x128xf32>
    %cst_33 = arith.constant dense<0.000000e+00> : vector<16x128xf32>
    %30 = tpu.matmul %27, %29, %cst_33 {dimension_numbers = #tpu.dot_dimension_numbers<[1], [0], [0], [1], [0, 0, 1, 1], [], []>} : vector<16x80xf32>, vector<80x128xf32>, vector<16x128xf32> -> vector<16x128xf32>
    %31 = arith.addf %26, %30 : vector<16x128xf32>
    %c4 = arith.constant 4 : index
    %c0_34 = arith.constant 0 : index
    %32 = vector.load %arg7[%c4, %c0_34] : memref<20x80xf32, #tpu.memory_space<vmem>>, vector<16x80xf32>
    %c4_35 = arith.constant 4 : index
    %c0_36 = arith.constant 0 : index
    %c0_37 = arith.constant 0 : index
    %33 = vector.load %arg2[%c4_35, %c0_36, %c0_37] : memref<5x80x128xf32, #tpu.memory_space<vmem>>, vector<1x80x128xf32>
    %34 = vector.shape_cast %33 : vector<1x80x128xf32> to vector<80x128xf32>
    %cst_38 = arith.constant dense<0.000000e+00> : vector<16x128xf32>
    %35 = tpu.matmul %32, %34, %cst_38 {dimension_numbers = #tpu.dot_dimension_numbers<[1], [0], [0], [1], [0, 0, 1, 1], [], []>} : vector<16x80xf32>, vector<80x128xf32>, vector<16x128xf32> -> vector<16x128xf32>
    %36 = arith.addf %31, %35 : vector<16x128xf32>
    %c0_39 = arith.constant 0 : index
    %c0_40 = arith.constant 0 : index
    %37 = vector.load %arg3[%c0_39, %c0_40] : memref<1x128xf32, #tpu.memory_space<vmem>>, vector<1x128xf32>
    %38 = vector.broadcast %37 : vector<1x128xf32> to vector<16x128xf32>
    %39 = arith.addf %36, %38 : vector<16x128xf32>
    %cst_41 = arith.constant 0.000000e+00 : f32
    %40 = vector.broadcast %cst_41 : f32 to vector<16x128xf32>
    %41 = arith.maximumf %39, %40 : vector<16x128xf32>
    %cst_42 = arith.constant 0.000000e+00 : f32
    %42 = vector.broadcast %cst_42 : f32 to vector<2x160xf32>
    %c0_43 = arith.constant 0 : index
    %c0_44 = arith.constant 0 : index
    %43 = vector.load %arg8[%c0_43, %c0_44] : memref<20x160xf32, #tpu.memory_space<vmem>>, vector<2x160xf32>
    tpu.vector_store %arg8[%c0_43, %c0_44], %42 {strides = array<i32>} : memref<20x160xf32, #tpu.memory_space<vmem>>, vector<2x160xf32>,
    %cst_45 = arith.constant 0.000000e+00 : f32
    %44 = vector.broadcast %cst_45 : f32 to vector<2x160xf32>
    %c18_46 = arith.constant 18 : index
    %c0_47 = arith.constant 0 : index
    %45 = vector.load %arg8[%c18_46, %c0_47] : memref<20x160xf32, #tpu.memory_space<vmem>>, vector<2x160xf32>
    tpu.vector_store %arg8[%c18_46, %c0_47], %44 {strides = array<i32>} : memref<20x160xf32, #tpu.memory_space<vmem>>, vector<2x160xf32>,
    %cst_48 = arith.constant 0.000000e+00 : f32
    %46 = vector.broadcast %cst_48 : f32 to vector<16x16xf32>
    %c2_49 = arith.constant 2 : index
    %c0_50 = arith.constant 0 : index
    %47 = vector.load %arg8[%c2_49, %c0_50] : memref<20x160xf32, #tpu.memory_space<vmem>>, vector<16x16xf32>
    tpu.vector_store %arg8[%c2_49, %c0_50], %46 {strides = array<i32>} : memref<20x160xf32, #tpu.memory_space<vmem>>, vector<16x16xf32>,
    %cst_51 = arith.constant 0.000000e+00 : f32
    %48 = vector.broadcast %cst_51 : f32 to vector<16x16xf32>
    %c2_52 = arith.constant 2 : index
    %c144 = arith.constant 144 : index
    %49 = vector.load %arg8[%c2_52, %c144] : memref<20x160xf32, #tpu.memory_space<vmem>>, vector<16x16xf32>
    tpu.vector_store %arg8[%c2_52, %c144], %48 {strides = array<i32>} : memref<20x160xf32, #tpu.memory_space<vmem>>, vector<16x16xf32>,
    %c2_53 = arith.constant 2 : index
    %c16 = arith.constant 16 : index
    %50 = vector.load %arg8[%c2_53, %c16] : memref<20x160xf32, #tpu.memory_space<vmem>>, vector<16x128xf32>
    tpu.vector_store %arg8[%c2_53, %c16], %41 {strides = array<i32>} : memref<20x160xf32, #tpu.memory_space<vmem>>, vector<16x128xf32>,
    %cst_54 = arith.constant 0.000000e+00 : f32
    %51 = vector.broadcast %cst_54 : f32 to vector<16x128xf32>
    %c0_55 = arith.constant 0 : index
    %c0_56 = arith.constant 0 : index
    %52 = vector.load %arg8[%c0_55, %c0_56] : memref<20x160xf32, #tpu.memory_space<vmem>>, vector<16x160xf32>
    %c0_57 = arith.constant 0 : index
    %c0_58 = arith.constant 0 : index
    %c0_59 = arith.constant 0 : index
    %53 = vector.load %arg4[%c0_57, %c0_58, %c0_59] : memref<5x160x128xf32, #tpu.memory_space<vmem>>, vector<1x160x128xf32>
    %54 = vector.shape_cast %53 : vector<1x160x128xf32> to vector<160x128xf32>
    %cst_60 = arith.constant dense<0.000000e+00> : vector<16x128xf32>
    %55 = tpu.matmul %52, %54, %cst_60 {dimension_numbers = #tpu.dot_dimension_numbers<[1], [0], [0], [1], [0, 0, 1, 1], [], []>} : vector<16x160xf32>, vector<160x128xf32>, vector<16x128xf32> -> vector<16x128xf32>
    %56 = arith.addf %51, %55 : vector<16x128xf32>
    %c1_61 = arith.constant 1 : index
    %c0_62 = arith.constant 0 : index
    %57 = vector.load %arg8[%c1_61, %c0_62] : memref<20x160xf32, #tpu.memory_space<vmem>>, vector<16x160xf32>
    %c1_63 = arith.constant 1 : index
    %c0_64 = arith.constant 0 : index
    %c0_65 = arith.constant 0 : index
    %58 = vector.load %arg4[%c1_63, %c0_64, %c0_65] : memref<5x160x128xf32, #tpu.memory_space<vmem>>, vector<1x160x128xf32>
    %59 = vector.shape_cast %58 : vector<1x160x128xf32> to vector<160x128xf32>
    %cst_66 = arith.constant dense<0.000000e+00> : vector<16x128xf32>
    %60 = tpu.matmul %57, %59, %cst_66 {dimension_numbers = #tpu.dot_dimension_numbers<[1], [0], [0], [1], [0, 0, 1, 1], [], []>} : vector<16x160xf32>, vector<160x128xf32>, vector<16x128xf32> -> vector<16x128xf32>
    %61 = arith.addf %56, %60 : vector<16x128xf32>
    %c2_67 = arith.constant 2 : index
    %c0_68 = arith.constant 0 : index
    %62 = vector.load %arg8[%c2_67, %c0_68] : memref<20x160xf32, #tpu.memory_space<vmem>>, vector<16x160xf32>
    %c2_69 = arith.constant 2 : index
    %c0_70 = arith.constant 0 : index
    %c0_71 = arith.constant 0 : index
    %63 = vector.load %arg4[%c2_69, %c0_70, %c0_71] : memref<5x160x128xf32, #tpu.memory_space<vmem>>, vector<1x160x128xf32>
    %64 = vector.shape_cast %63 : vector<1x160x128xf32> to vector<160x128xf32>
    %cst_72 = arith.constant dense<0.000000e+00> : vector<16x128xf32>
    %65 = tpu.matmul %62, %64, %cst_72 {dimension_numbers = #tpu.dot_dimension_numbers<[1], [0], [0], [1], [0, 0, 1, 1], [], []>} : vector<16x160xf32>, vector<160x128xf32>, vector<16x128xf32> -> vector<16x128xf32>
    %66 = arith.addf %61, %65 : vector<16x128xf32>
    %c3_73 = arith.constant 3 : index
    %c0_74 = arith.constant 0 : index
    %67 = vector.load %arg8[%c3_73, %c0_74] : memref<20x160xf32, #tpu.memory_space<vmem>>, vector<16x160xf32>
    %c3_75 = arith.constant 3 : index
    %c0_76 = arith.constant 0 : index
    %c0_77 = arith.constant 0 : index
    %68 = vector.load %arg4[%c3_75, %c0_76, %c0_77] : memref<5x160x128xf32, #tpu.memory_space<vmem>>, vector<1x160x128xf32>
    %69 = vector.shape_cast %68 : vector<1x160x128xf32> to vector<160x128xf32>
    %cst_78 = arith.constant dense<0.000000e+00> : vector<16x128xf32>
    %70 = tpu.matmul %67, %69, %cst_78 {dimension_numbers = #tpu.dot_dimension_numbers<[1], [0], [0], [1], [0, 0, 1, 1], [], []>} : vector<16x160xf32>, vector<160x128xf32>, vector<16x128xf32> -> vector<16x128xf32>
    %71 = arith.addf %66, %70 : vector<16x128xf32>
    %c4_79 = arith.constant 4 : index
    %c0_80 = arith.constant 0 : index
    %72 = vector.load %arg8[%c4_79, %c0_80] : memref<20x160xf32, #tpu.memory_space<vmem>>, vector<16x160xf32>
    %c4_81 = arith.constant 4 : index
    %c0_82 = arith.constant 0 : index
    %c0_83 = arith.constant 0 : index
    %73 = vector.load %arg4[%c4_81, %c0_82, %c0_83] : memref<5x160x128xf32, #tpu.memory_space<vmem>>, vector<1x160x128xf32>
    %74 = vector.shape_cast %73 : vector<1x160x128xf32> to vector<160x128xf32>
    %cst_84 = arith.constant dense<0.000000e+00> : vector<16x128xf32>
    %75 = tpu.matmul %72, %74, %cst_84 {dimension_numbers = #tpu.dot_dimension_numbers<[1], [0], [0], [1], [0, 0, 1, 1], [], []>} : vector<16x160xf32>, vector<160x128xf32>, vector<16x128xf32> -> vector<16x128xf32>
    %76 = arith.addf %71, %75 : vector<16x128xf32>
    %c0_85 = arith.constant 0 : index
    %c0_86 = arith.constant 0 : index
    %77 = vector.load %arg5[%c0_85, %c0_86] : memref<1x128xf32, #tpu.memory_space<vmem>>, vector<1x128xf32>
    %78 = vector.broadcast %77 : vector<1x128xf32> to vector<16x128xf32>
    %79 = arith.addf %76, %78 : vector<16x128xf32>
    %cst_87 = arith.constant 0.000000e+00 : f32
    %80 = vector.broadcast %cst_87 : f32 to vector<16x128xf32>
    %81 = arith.maximumf %79, %80 : vector<16x128xf32>
    %c0_88 = arith.constant 0 : index
    %c0_89 = arith.constant 0 : index
    %c0_90 = arith.constant 0 : index
    %82 = vector.load %arg6[%c0_88, %c0_89, %c0_90] : memref<1x16x128xf32, #tpu.memory_space<vmem>>, vector<1x16x128xf32>
    %83 = vector.shape_cast %82 : vector<1x16x128xf32> to vector<16x128xf32>
    %84 = vector.shape_cast %81 : vector<16x128xf32> to vector<1x16x128xf32>
    tpu.vector_store %arg6[%c0_88, %c0_89, %c0_90], %84 {strides = array<i32>} : memref<1x16x128xf32, #tpu.memory_space<vmem>>, vector<1x16x128xf32>,
    return
  }
  func.func @transform_0(%arg0: i32) -> (i32, i32, i32) {
    %c0_i32 = arith.constant 0 : i32
    %c0_i32_0 = arith.constant 0 : i32
    %c0_i32_1 = arith.constant 0 : i32
    return %arg0, %c0_i32, %c0_i32_0 : i32, i32, i32
  }
  func.func @transform_1(%arg0: i32) -> (i32, i32, i32) {
    %c0_i32 = arith.constant 0 : i32
    %c0_i32_0 = arith.constant 0 : i32
    %c0_i32_1 = arith.constant 0 : i32
    %c0_i32_2 = arith.constant 0 : i32
    return %c0_i32, %c0_i32_0, %c0_i32_1 : i32, i32, i32
  }
  func.func @transform_2(%arg0: i32) -> (i32, i32) {
    %c0_i32 = arith.constant 0 : i32
    %c0_i32_0 = arith.constant 0 : i32
    %c0_i32_1 = arith.constant 0 : i32
    return %c0_i32, %c0_i32_0 : i32, i32
  }
  func.func @transform_3(%arg0: i32) -> (i32, i32, i32) {
    %c0_i32 = arith.constant 0 : i32
    %c0_i32_0 = arith.constant 0 : i32
    %c0_i32_1 = arith.constant 0 : i32
    %c0_i32_2 = arith.constant 0 : i32
    return %c0_i32, %c0_i32_0, %c0_i32_1 : i32, i32, i32
  }
  func.func @transform_4(%arg0: i32) -> (i32, i32) {
    %c0_i32 = arith.constant 0 : i32
    %c0_i32_0 = arith.constant 0 : i32
    %c0_i32_1 = arith.constant 0 : i32
    return %c0_i32, %c0_i32_0 : i32, i32
  }
  func.func @transform_5(%arg0: i32) -> (i32, i32, i32) {
    %c0_i32 = arith.constant 0 : i32
    %c0_i32_0 = arith.constant 0 : i32
    %c0_i32_1 = arith.constant 0 : i32
    return %arg0, %c0_i32, %c0_i32_0 : i32, i32, i32
  }
}

</mosaic_0001>

<bundles_post_ra>
// kernel: tpu_custom_call.1
= control target key start
LH: loop header
LB: loop body
LE: loop exit
PB: predicated region body
PF: predicated region fallthrough
CT: control target
= control target key end

     0   :  { %10 = vsyncpa [#allocation5], 0  ;;  %s2669_s0 = inlined_call_operand.hbm [shape: f32[2,16,64], index: 0, kind: input, shape index: {}]   ;;  %s2670_s1 = inlined_call_operand.hbm [shape: f32[5,80,128], index: 1, kind: input, shape index: {}]   ;;  %s2671_s2 = inlined_call_operand.vmem [shape: f32[1,128], index: 2, kind: input, shape index: {}]   ;;  %s2672_s3 = inlined_call_operand.hbm [shape: f32[5,160,128], index: 3, kind: input, shape index: {}]   ;;  %s2673_s4 = inlined_call_operand.vmem [shape: f32[1,128], index: 4, kind: input, shape index: {}]   ;;  %s2674_s5 = inlined_call_operand.hbm [shape: f32[2,16,128], index: 5, kind: output, shape index: {}]  }
   0x1   :  { %12 = vsyncpa [#allocation5 + $0x1], 0 }
   0x2   :  { %13 = vsyncpa [#allocation8], 0 }
   0x3   :  { %14 = vsyncpa [#allocation6], 0 }
   0x4   :  { %16 = vsyncpa [#allocation6 + $0x1], 0  ;;  %s2287_s18 = smov 0   ;;  %s2289_s19 = smov 0  }
   0x5   :  { %s2291_s20 = smov 0   ;;  %s2293_s21 = smov 0  }
   0x6 LB: > { %s2308_s22 = sadd.s32 4294967295, %s2244_s21   ;;  %s1539_s23 = sadd.s32 4294967294, %s2244_s21   ;;  %s2244_s21 = sphi %s2293_s21, %s2694_s21   ;;  %s2240_s20 = sphi %s2291_s20, %s2693_s20   ;;  %s2236_s19 = sphi %s2289_s19, %s2692_s19   ;;  %s2232_s18 = sphi %s2287_s18, %s2691_s18  }
   0x7   : > { %p42_p0 = scmp.ne.s32.totalorder %s2236_s19, %s2232_s18  ;;  %p2675_p1 = scmp.eq.s32.totalorder %s2308_s22, 0 }
   0x8   : > { %p156_p3 = scmp.eq.s32.totalorder %s1539_s23, 1  ;;  %p1540_p5 = scmp.ge.s32.totalorder %s2244_s21, 1 }
   0x9   : > { %p2317_p4 = por %p2675_p1, %p42_p0  ;;  %p163_p7 = scmp.lt.s32.totalorder %s2244_s21, 3 }
   0xa   : > { %p2322_p6 = por %p156_p3, %p42_p0  ;;  %s2246_s27 = smov [#allocation7]  }
   0xb   : > { %s2678_s24 = scalar_select %p2317_p4, 1, 0 }
   0xc   : > { %s2679_s25 = scalar_select %p2322_p6, 1, 0 }
   0xd   : > { %p2327_p8 = pnand %p1540_p5, %p163_p7  ;;  %s175_s28 = sshll.u32 %s2246_s27, 4  ;;  %s2331_s28 = int_to_ptr.vmem [resolvable:$true] %s175_s28 }
   0xe   : > { %s2247_s30 = smov [#allocation9]   ;;  %s2088_s9 = scalar_lea.hbm %s2670_s1, 6400 }
   0xf   : > { %p2026_p9 = pneg %p2327_p8  ;;  %s191_s6 = sshll.u32 %s2247_s30, 4  ;;  %s2342_s6 = int_to_ptr.vmem [resolvable:$true] %s191_s6 }
  0x10   : > { %p2089_p12 = scmp.ne.s32.totalorder %s2670_s1, %s2088_s9  ;;  %p2095_p5 = scmp.lt.u32.totalorder %s2088_s9, %s2670_s1 }
  0x11   : > { %p2338_p11 = pnand %p2026_p9, %p2675_p1 }
  0x13   : > { %p2090_p13 = pneg %p2338_p11 }
  0x15   : > { %p2091_p0 = pnand %p2090_p13, %p2089_p12 }
  0x17   : > { %p2092_p3 = pneg %p2091_p0 }
  0x19   : > { %p2097_p7 = pnand %p2095_p5, %p2092_p3 }
  0x1b   : > { %2100 = shalt.err (!%p2097_p7)
}
  0x1c   : > { %s2101_s14 = scalar_lea.vmem %s2331_s28, 6400  ;;  %p2109_p2 = scmp.lt.s32.totalorder %s2331_s28, %s2331_s28 }
  0x1d   : > { %p2102_p9 = scmp.ne.s32.totalorder %s2331_s28, %s2101_s14  ;;  %p2110_p12 = scmp.lt.s32.totalorder %s2101_s14, %s2101_s14 }
  0x1f   : > { %p2104_p10 = pnand %p2102_p9, %p2090_p13  ;;  %p2111_p0 = por %p2110_p12, %p2109_p2 }
  0x21   : > { %p2105_p1 = pneg %p2104_p10 }
  0x23   : > { %p2112_p6 = pnand %p2111_p0, %p2105_p1 }
  0x25   : > { %2115 = shalt.err (!%p2112_p6)
}
  0x26   : > { %s2248_s15 = smov 128   ;;  %s2249_s16 = smov 8  }
  0x27   : > { %2029 = dma.hbm_to_vmem [thread:$0]  (!%p2338_p11), %s2670_s1, 6400, %s2331_s28, [#allocation8], %s2248_s15, %s2248_s15, %s2249_s16  }
  0x28   : > { %s2116_s7 = scalar_lea.hbm %s2672_s3, 12800 }
  0x29   : > { %p2117_p1 = scmp.ne.s32.totalorder %s2672_s3, %s2116_s7  ;;  %p2123_p10 = scmp.lt.u32.totalorder %s2116_s7, %s2672_s3 }
  0x2b   : > { %p2119_p2 = pnand %p2117_p1, %p2090_p13 }
  0x2d   : > { %p2120_p6 = pneg %p2119_p2 }
  0x2f   : > { %p2125_p3 = pnand %p2123_p10, %p2120_p6 }
  0x31   : > { %2128 = shalt.err (!%p2125_p3)
}
  0x32   : > { %s2129_s28 = scalar_lea.vmem %s2342_s6, 12800  ;;  %p2137_p12 = scmp.lt.s32.totalorder %s2342_s6, %s2342_s6 }
  0x33   : > { %p2130_p5 = scmp.ne.s32.totalorder %s2342_s6, %s2129_s28  ;;  %p2138_p0 = scmp.lt.s32.totalorder %s2129_s28, %s2129_s28 }
  0x35   : > { %p2132_p7 = pnand %p2130_p5, %p2090_p13  ;;  %p2139_p1 = por %p2138_p0, %p2137_p12 }
  0x37   : > { %p2133_p9 = pneg %p2132_p7 }
  0x39   : > { %p2140_p2 = pnand %p2139_p1, %p2133_p9 }
  0x3b   : > { %2143 = shalt.err (!%p2140_p2)
}
  0x3c   : > { %2032 = dma.hbm_to_vmem [thread:$0]  (!%p2338_p11), %s2672_s3, 12800, %s2342_s6, [#allocation8], %s2248_s15, %s2248_s15, %s2249_s16  }
  0x3d   : > { %s2403_s29 = sadd.s32 1, %s2244_s21   ;;  %s29_s14 = sadd.s32 1, %s2240_s20 }
  0x3e   : > { %s26_s17 = ssub.s32 %s2244_s21, %s2403_s29  ;;  %p36_p13 = scmp.ne.s32.totalorder %s2240_s20, %s2236_s19 }
  0x3f   : > { %p27_p6 = scmp.eq.s32.totalorder %s26_s17, 0  ;;  %p37_p10 = scmp.eq.s32.totalorder %s2244_s21, 0 }
  0x40   : > { %p2682_p3 = scmp.eq.s32.totalorder %s2308_s22, 1  ;;  %p2043_p7 = scmp.lt.s32.totalorder %s2244_s21, 2 }
  0x41   : > { %s2419_s27 = scalar_select %p27_p6, %s2240_s20, %s29_s14  }
  0x42   : > { %p2413_p5 = por %p2682_p3, %p36_p13  ;;  %p38_p9 = por %p37_p10, %p36_p13 }
  0x43   : > { %s208_s30 = sand.u32 1, %s2240_s20   ;;  %s1579_s6 = sshll.u32 %s2244_s21, 8 }
  0x44   : > { %s2683_s23 = scalar_select %p2413_p5, 1, 0 }
  0x45   : > { %s1544_s7 = sshll.u32 %s208_s30, 4  ;;  %s2426_s10 = scalar_lea.hbm %s2669_s0, %s1579_s6 }
  0x46   : > { %s212_s11 = scalar_lea.vmem [#allocation4], %s1544_s7  ;;  %p2430_p11 = pnand %p2043_p7, %p38_p9 }
  0x47   : > { %s219_s28 = sshll.u32 %s212_s11, 4  ;;  %s2434_s13 = scalar_lea.sflag [#allocation5], %s208_s30  ;;  %s2428_s28 = int_to_ptr.vmem [resolvable:$true] %s219_s28 }
  0x48   : > { %s2144_s14 = scalar_lea.hbm %s2426_s10, 256  ;;  %p2146_p0 = pneg %p2430_p11 }
  0x49   : > { %p2145_p12 = scmp.ne.s32.totalorder %s2426_s10, %s2144_s14  ;;  %s2149_s6 = scalar_lea.hbm %s2669_s0, 512 }
  0x4a   : > { %p2150_p13 = scmp.lt.u32.totalorder %s2426_s10, %s2669_s0  ;;  %p2151_p6 = scmp.lt.u32.totalorder %s2149_s6, %s2144_s14 }
  0x4b   : > { %p2147_p1 = pnand %p2146_p0, %p2145_p12  ;;  %p2153_p3 = scmp.lt.u32.totalorder %s2144_s14, %s2426_s10 }
  0x4c   : > { %p2152_p10 = por %p2151_p6, %p2150_p13 }
  0x4d   : > { %p2148_p2 = pneg %p2147_p1 }
  0x4e   : > { %p2154_p7 = por %p2153_p3, %p2152_p10 }
  0x50   : > { %p2155_p9 = pnand %p2154_p7, %p2148_p2 }
  0x52   : > { %2158 = shalt.err (!%p2155_p9)
}
  0x53   : > { %s2159_s30 = scalar_lea.vmem %s2428_s28, 256  ;;  %s2250_s11 = smov [#allocation4]  }
  0x54   : > { %p2160_p12 = scmp.ne.s32.totalorder %s2428_s28, %s2159_s30  ;;  %s2164_s17 = sshll.u32 %s2250_s11, 4  ;;  %s2165_s17 = int_to_ptr.vmem [resolvable:$false] %s2164_s17 }
  0x55   : > { %s2166_s7 = scalar_lea.vmem %s2165_s17, 512  ;;  %p2167_p4 = scmp.lt.s32.totalorder %s2428_s28, %s2165_s17 }
  0x56   : > { %p2162_p1 = pnand %p2160_p12, %p2146_p0  ;;  %p2168_p13 = scmp.lt.s32.totalorder %s2166_s7, %s2159_s30 }
  0x58   : > { %p2163_p5 = pneg %p2162_p1  ;;  %p2169_p6 = por %p2168_p13, %p2167_p4 }
  0x5a   : > { %p2170_p10 = pnand %p2169_p6, %p2163_p5 }
  0x5c   : > { %2173 = shalt.err (!%p2170_p10)
}
  0x5d   : > { %2036 = dma.hbm_to_vmem [thread:$0]  (!%p2430_p11), %s2426_s10, 256, %s2428_s28, %s2434_s13, %s2248_s15, %s2248_s15, %s2249_s16  }
  0x5e   : > { %231 = sbr.rel (%p2327_p8) target bundleno = 1021 (0x3fd), region = 40  ;;  %s2468_s14 = sand.u32 (!%p2327_p8), 1, %s2236_s19  }
  0x5f   : > { %s1548_s6 = sshll.u32 (!%p2327_p8), %s2468_s14, 4  ;;  %s234_s8 = scalar_lea.sflag (!%p2327_p8), [#allocation5], %s2468_s14 }
  0x60   : > { %s237_s12 = scalar_lea.vmem (!%p2327_p8), [#allocation4], %s1548_s6  ;;  %p2685_p4 = scmp.ne.s32.totalorder (!%p2327_p8), %s2678_s24, 0 }
  0x65   : > { %2219 = dma.done.wait (%p2685_p4), %s234_s8, 256  }
  0x66   : > { %2221 = vsyncadd (%p2685_p4), %s234_s8, 4294967040  ;;  %p2686_p5 = scmp.eq.s32.totalorder %s2308_s22, 0 }
  0x68   : > { %2223 = dma.done.wait (%p2686_p5), [#allocation8], 19200   ;;  %p2687_p8 = pmov %p2686_p5 }
  0x69   : > { %vm275_vm0 = vcmask 64512   ;;  %vm278_vm1 = vcmask 654912   ;;  %v2251_v0 = vmov 0.0   ;;  %vm272_vm2 = vcmask 648192   ;;  %v281_v1 = vld [vmem:[%s237_s12] sm:$0xff]  ;;  %s2252_s24 = smov 8  }
  0x6a   : > { %2225 = vsyncadd (%p2687_p8), [#allocation8], 4294948096  ;;  %276 = vst.msk [vmem:[#allocation2 + $0x2] sm:$0xff] %vm275_vm0, %v2251_v0  ;;  %v309_v2 = vld [vmem:[#allocation7 + $0x50] sm:$0xff]  ;;  %285 = vrot.lane.b32.xlu0 %v281_v1, %s2252_s24  ;;  %v310_v3 = vld [vmem:[#allocation7 + $0x58] sm:$0xff]  ;;  %vm291_vm3 = vcmask 588864  }
  0x6b   : > { %277 = vst.msk [vmem:[#allocation2 + $0xa] sm:$0xff] %vm275_vm0, %v2251_v0  ;;  %781 = vst [vmem:[#allocation3] sm:$0x3] %v2251_v0  ;;  %v311_v4 = vld [vmem:[#allocation7 + $0x60] sm:$0xff]  ;;  %v312_v5 = vld [vmem:[#allocation7 + $0x68] sm:$0xff]  ;;  %v1756_v7 = vpack.c.bf16 %v310_v3, %v309_v2  ;;  %vm319_vm4 = vcmask 654336  }
  0x6c   : > { %784 = vst [vmem:[#allocation3 + $0x20] sm:$0xc] %v2251_v0  ;;  %279 = vst.msk [vmem:[#allocation2 + $0x2] sm:$0xff] %vm278_vm1, %v2251_v0  ;;  %v282_v6 = vld [vmem:[%s237_s12 + $0x8] sm:$0xff]  ;;  %v1760_v8 = vpack.c.bf16 %v312_v5, %v311_v4  ;;  %v313_v9 = vld [vmem:[#allocation7 + $0x70] sm:$0xff]  ;;  %vm791_vm5 = vcmask 123904  }
  0x6d   : > { %280 = vst.msk [vmem:[#allocation2 + $0xa] sm:$0xff] %vm278_vm1, %v2251_v0  ;;  %v314_v10 = vld [vmem:[#allocation7 + $0x78] sm:$0xff]  ;;  %1757 = vmatprep.subr.bf16.mxu0 %v1756_v7  ;;  %v315_v12 = vld [vmem:[#allocation7 + $0x80] sm:$0xff]  ;;  %v316_v13 = vld [vmem:[#allocation7 + $0x88] sm:$0xff]  ;;  %vm797_vm6 = vcmask 255104   ;;  %vm787_vm7 = vcmask 130050  }
  0x6e   : > { %273 = vst.msk [vmem:[#allocation2] sm:$0x3] %vm272_vm2, %v2251_v0  ;;  %274 = vst.msk [vmem:[#allocation2 + $0x12] sm:$0x3] %vm272_vm2, %v2251_v0  ;;  %287 = vrot.lane.b32.xlu0 %v282_v6, %s2252_s24  ;;  %1759 = vmatpush3.bf16.msra.mxu0 %v1756_v7  ;;  %v1764_v11 = vpack.c.bf16 %v314_v10, %v313_v9  ;;  %v1768_v14 = vpack.c.bf16 %v316_v13, %v315_v12  ;;  %v317_v15 = vld [vmem:[#allocation7 + $0x90] sm:$0xff]  ;;  %v318_v16 = vld [vmem:[#allocation7 + $0x98] sm:$0xff] }
  0x6f   : > { %1761 = vmatprep.subr.bf16.mxu0 %v1760_v8  ;;  %v1772_v17 = vpack.c.bf16 %v318_v16, %v317_v15  ;;  %v296_v18 = vld [vmem:[#allocation7] sm:$0xff]  ;;  %v297_v19 = vld [vmem:[#allocation7 + $0x8] sm:$0xff]  ;;  %v298_v24 = vld [vmem:[#allocation7 + $0x10] sm:$0xff]  ;;  %792 = vst.msk [vmem:[#allocation3 + $0x20] sm:$0x3] %vm791_vm5, %v2251_v0  ;;  %vm793_vm8 = vcmask 261250  }
  0x70   : > { %v1776_v20 = vpack.c.bf16 %v297_v19, %v296_v18  ;;  %v299_v25 = vld [vmem:[#allocation7 + $0x18] sm:$0xff]  ;;  %v300_v28 = vld [vmem:[#allocation7 + $0x20] sm:$0xff]  ;;  %v301_v29 = vld [vmem:[#allocation7 + $0x28] sm:$0xff]  ;;  %798 = vst.msk [vmem:[#allocation3 + $0x28] sm:$0x3] %vm797_vm6, %v2251_v0  ;;  %vm789_vm9 = vcmask 130048  }
  0x71   : > { %v1780_v26 = vpack.c.bf16 %v299_v25, %v298_v24  ;;  %v1784_v31 = vpack.c.bf16 %v301_v29, %v300_v28  ;;  %v302_v32 = vld [vmem:[#allocation7 + $0x30] sm:$0xff]  ;;  %v303_v33 = vld [vmem:[#allocation7 + $0x38] sm:$0xff]  ;;  %v304_v35 = vld [vmem:[#allocation7 + $0x40] sm:$0xff]  ;;  %788 = vst.msk [vmem:[#allocation3] sm:$0xfc] %vm787_vm7, %v2251_v0  ;;  %vm795_vm10 = vcmask 261248  }
  0x72   : > { %1763 = vmatpush3.bf16.msra.mxu0 %v1760_v8  ;;  %v1788_v34 = vpack.c.bf16 %v303_v33, %v302_v32  ;;  %v305_v36 = vld [vmem:[#allocation7 + $0x48] sm:$0xff]  ;;  %v485_v38 = vld [vmem:[#allocation7 + $0xa0] sm:$0xff]  ;;  %v487_v41 = vld [vmem:[#allocation7 + $0xb0] sm:$0xff]  ;;  %794 = vst.msk [vmem:[#allocation3 + $0x8] sm:$0xfc] %vm793_vm8, %v2251_v0  ;;  %vm782_vm11 = vcmask 254976  }
  0x73   : > { %1765 = vmatprep.subr.bf16.mxu0 %v1764_v11  ;;  %v1792_v37 = vpack.c.bf16 %v305_v36, %v304_v35  ;;  %v486_v39 = vld [vmem:[#allocation7 + $0xa8] sm:$0xff]  ;;  %v488_v42 = vld [vmem:[#allocation7 + $0xb8] sm:$0xff]  ;;  %v489_v45 = vld [vmem:[#allocation7 + $0xc0] sm:$0xff]  ;;  %790 = vst.msk [vmem:[#allocation3 + $0x10] sm:$0xff] %vm789_vm9, %v2251_v0  ;;  %vm785_vm12 = vcmask 257026   ;;  %vm801_vm13 = vcmask 1041408  }
  0x74   : > { %v1796_v40 = vpack.c.bf16 %v486_v39, %v485_v38  ;;  %v1800_v43 = vpack.c.bf16 %v488_v42, %v487_v41  ;;  %v490_v46 = vld [vmem:[#allocation7 + $0xc8] sm:$0xff]  ;;  %v491_v49 = vld [vmem:[#allocation7 + $0xd0] sm:$0xff]  ;;  %v492_v50 = vld [vmem:[#allocation7 + $0xd8] sm:$0xff]  ;;  %796 = vst.msk [vmem:[#allocation3 + $0x18] sm:$0xff] %vm795_vm10, %v2251_v0  ;;  %s2254_s16 = smov 16   ;;  %vm820_vm14 = vcmask 1041536  }
  0x75   : > { %v1804_v48 = vpack.c.bf16 %v490_v46, %v489_v45  ;;  %v1808_v51 = vpack.c.bf16 %v492_v50, %v491_v49  ;;  %v493_v52 = vld [vmem:[#allocation7 + $0xe0] sm:$0xff]  ;;  %v494_v53 = vld [vmem:[#allocation7 + $0xe8] sm:$0xff]  ;;  %v581_v55 = vld [vmem:[#allocation7 + $0xf0] sm:$0xff]  ;;  %783 = vst.msk [vmem:[#allocation3 + $0x8] sm:$0x3] %vm782_vm11, %v2251_v0  ;;  %vm814_vm15 = vcmask 1047682  }
  0x76   : > { %1767 = vmatpush3.bf16.msra.mxu0 %v1764_v11  ;;  %v1812_v54 = vpack.c.bf16 %v494_v53, %v493_v52  ;;  %v582_v56 = vld [vmem:[#allocation7 + $0xf8] sm:$0xff]  ;;  %v583_v58 = vld [vmem:[#allocation7 + $0x100] sm:$0xff]  ;;  %v584_v59 = vld [vmem:[#allocation7 + $0x108] sm:$0xff]  ;;  %786 = vst.msk [vmem:[#allocation3 + $0x28] sm:$0xc] %vm785_vm12, %v2251_v0  ;;  %vm817_vm0 = vcmask 1047680  }
  0x77   : > { %1769 = vmatprep.subr.bf16.mxu0 %v1768_v14  ;;  %v1816_v57 = vpack.c.bf16 %v582_v56, %v581_v55  ;;  %v1820_v60 = vpack.c.bf16 %v584_v59, %v583_v58  ;;  %v585_v62 = vld [vmem:[#allocation7 + $0x110] sm:$0xff]  ;;  %v586_v63 = vld [vmem:[#allocation7 + $0x118] sm:$0xff]  ;;  %v587_v3 = vld [vmem:[#allocation7 + $0x120] sm:$0xff]  ;;  %vm878_vm1 = vcmask 1046528   ;;  %vm891_vm2 = vcmask 261120   ;;  %s271_s13 = scalar_lea.vmem [#allocation10], %s1548_s6 }
  0x78   : > { %v1824_v2 = vpack.c.bf16 %v586_v63, %v585_v62  ;;  %v588_v4 = vld [vmem:[#allocation7 + $0x128] sm:$0xff]  ;;  %v589_v6 = vld [vmem:[#allocation7 + $0x130] sm:$0xff]  ;;  %v590_v7 = vld [vmem:[#allocation7 + $0x138] sm:$0xff]  ;;  %s1447_s9 = sshll.u32 %s271_s13, 4  ;;  %s1580_s30 = sshll.u32 %s2308_s22, 8  ;;  %s2619_s9 = int_to_ptr.vmem [resolvable:$true] %s1447_s9 }
  0x79   : > { %v1828_v5 = vpack.c.bf16 %v588_v4, %v587_v3  ;;  %v1832_v8 = vpack.c.bf16 %v590_v7, %v589_v6  ;;  %v677_v9 = vld [vmem:[#allocation7 + $0x140] sm:$0xff]  ;;  %v678_v10 = vld [vmem:[#allocation7 + $0x148] sm:$0xff]  ;;  %v679_v12 = vld [vmem:[#allocation7 + $0x150] sm:$0xff]  ;;  %s2624_s7 = scalar_lea.hbm %s2674_s5, %s1580_s30  ;;  %s1434_s8 = scalar_lea.sflag [#allocation6], %s2468_s14 }
  0x7a   : > { %1771 = vmatpush3.bf16.msra.mxu0 %v1768_v14  ;;  %v1836_v11 = vpack.c.bf16 %v678_v10, %v677_v9  ;;  %v680_v13 = vld [vmem:[#allocation7 + $0x158] sm:$0xff]  ;;  %v681_v16 = vld [vmem:[#allocation7 + $0x160] sm:$0xff]  ;;  %v686_v24 = vld [vmem:[#allocation7 + $0x188] sm:$0xff]  ;;  %s2174_s6 = scalar_lea.vmem %s2619_s9, 256  ;;  %p2688_p0 = scmp.ne.s32.totalorder %s2683_s23, 0 }
  0x7b   : > { %1773 = vmatprep.subr.bf16.mxu0 %v1772_v17  ;;  %v1840_v14 = vpack.c.bf16 %v680_v13, %v679_v12  ;;  %v853_v28 = vld [vmem:[#allocation9 + $0xa8] sm:$0xff]  ;;  %v1179_v29 = vld [vmem:[#allocation9 + $0x1e0] sm:$0xff]  ;;  %v854_v33 = vld [vmem:[#allocation9 + $0xb0] sm:$0xff]  ;;  %p2175_p11 = scmp.ne.s32.totalorder %s2619_s9, %s2174_s6  ;;  %s2255_s22 = smov [#allocation10]  }
  0x7c   : > { %v1180_v32 = vld [vmem:[#allocation9 + $0x1e8] sm:$0xff]  ;;  %v1181_v36 = vld [vmem:[#allocation9 + $0x1f0] sm:$0xff]  ;;  %v1183_v42 = vld [vmem:[#allocation9 + $0x200] sm:$0xff]  ;;  %s2178_s12 = sshll.u32 %s2255_s22, 4  ;;  %s2179_s12 = int_to_ptr.vmem [resolvable:$false] %s2178_s12 }
  0x7d   : > { %v1947_v35 = vpack.c.bf16 %v1180_v32, %v1179_v29  ;;  %v857_v41 = vld [vmem:[#allocation9 + $0xc8] sm:$0xff]  ;;  %v858_v46 = vld [vmem:[#allocation9 + $0xd0] sm:$0xff]  ;;  %v1186_v49 = vld [vmem:[#allocation9 + $0x218] sm:$0xff]  ;;  %p2176_p2 = pnand %p2175_p11, %p2688_p0  ;;  %s2180_s26 = scalar_lea.vmem %s2179_s12, 512 }
  0x7e   : > { %1775 = vmatpush3.bf16.msra.mxu0 %v1772_v17  ;;  %v682_v17 = vld [vmem:[#allocation7 + $0x168] sm:$0xff]  ;;  %v860_v52 = vld [vmem:[#allocation9 + $0xe0] sm:$0xff]  ;;  %v861_v53 = vld [vmem:[#allocation9 + $0xe8] sm:$0xff]  ;;  %p2181_p7 = scmp.lt.s32.totalorder %s2619_s9, %s2179_s12  ;;  %p2182_p9 = scmp.lt.s32.totalorder %s2180_s26, %s2174_s6 }
  0x7f   : > { %1777 = vmatprep.subr.bf16.mxu0 %v1776_v20  ;;  %v1844_v19 = vpack.c.bf16 %v682_v17, %v681_v16  ;;  %v1188_v55 = vld [vmem:[#allocation9 + $0x228] sm:$0xff]  ;;  %v1869_v56 = vpack.c.bf16 %v861_v53, %v860_v52  ;;  %v862_v58 = vld [vmem:[#allocation9 + $0xf0] sm:$0xff]  ;;  %v863_v59 = vld [vmem:[#allocation9 + $0xf8] sm:$0xff]  ;;  %p2177_p3 = pneg %p2176_p2 }
  0x80   : > { %v1872_v62 = vpack.c.bf16 %v863_v59, %v862_v58  ;;  %v1191_v4 = vld [vmem:[#allocation9 + $0x240] sm:$0xff]  ;;  %v866_v7 = vld [vmem:[#allocation9 + $0x110] sm:$0xff]  ;;  %v1562_v9 = vld [vmem:[%s2671_s2] ss:$0 sm:$0xff]  ;;  %p2183_p12 = por %p2182_p9, %p2181_p7 }
  0x81   : > { %v1194_v12 = vld [vmem:[#allocation9 + $0x258] sm:$0xff]  ;;  %v1195_v16 = vld [vmem:[#allocation9 + $0x260] sm:$0xff]  ;;  %v829_v58 = vld [vmem:[#allocation9 + $0x10] sm:$0xff] }
  0x82   : > { %p2184_p1 = pnand %p2183_p12, %p2177_p3 }
  0xdc   : > { %v286_v21 = vpop.permute.xlu0 %285 }
  0xdd   : > { %292 = vst.msk [vmem:[#allocation2 + $0x2] sm:$0xff] %vm291_vm3, %v286_v21  ;;  %v684_v21 = vld [vmem:[#allocation7 + $0x178] sm:$0xff] }
  0xe0   : > { %v288_v22 = vpop.permute.xlu0 %287 }
  0xe1   : > { %293 = vst.msk [vmem:[#allocation2 + $0xa] sm:$0xff] %vm291_vm3, %v288_v22  ;;  %vm1203_vm3 = vcmask 1044480  }
  0xe4   : > { %v306_v23 = vld [vmem:[#allocation2 + $0x1] sm:$0xff] }
  0xe5   : > { %1661 = vmatprep.mubr.msk.f32.mxu0 %vm319_vm4, %v306_v23  ;;  %v294_v30 = vld [vmem:[#allocation2] sm:$0xff]  ;;  %v685_v23 = vld [vmem:[#allocation7 + $0x180] sm:$0xff] }
  0xe6   : > { %v482_v47 = vld [vmem:[#allocation2 + $0x2] sm:$0xff]  ;;  %v1852_v25 = vpack.c.bf16 %v686_v24, %v685_v23  ;;  %v871_v23 = vld [vmem:[#allocation9 + $0x138] sm:$0xff] }
  0xe8   : > { %v307_v27 = vld [vmem:[#allocation2 + $0x9] sm:$0xff] }
  0xe9   : > { %1662 = vmatmul.mubr.msk.f32.vlgmr.msra.gmra.mrb[0].mxu0 %vm319_vm4, %v307_v27  ;;  %v295_v44 = vld [vmem:[#allocation2 + $0x8] sm:$0xff]  ;;  %v852_v27 = vld [vmem:[#allocation9 + $0xa0] sm:$0xff] }
  0xea   : > { %1779 = vmatpush3.bf16.msra.mxu0 %v1776_v20  ;;  %1684 = vmatprep.mubr.msk.f32.mxu0 %vm319_vm4, %v294_v30  ;;  %v483_v61 = vld [vmem:[#allocation2 + $0xa] sm:$0xff]  ;;  %v683_v20 = vld [vmem:[#allocation7 + $0x170] sm:$0xff]  ;;  %v2253_v30 = vmov 0.0|0.0  }
  0xeb   : > { %1781 = vmatprep.subr.bf16.mxu0 %v1780_v26  ;;  %v578_v1 = vld [vmem:[#allocation2 + $0x3] sm:$0xff]  ;;  %v579_v15 = vld [vmem:[#allocation2 + $0xb] sm:$0xff]  ;;  %v1848_v22 = vpack.c.bf16 %v684_v21, %v683_v20  ;;  %1856 = vmatprep.subr.bf16.mxu1 %v2253_v30 }
  0xec   : > { %v674_v18 = vld [vmem:[#allocation2 + $0x4] sm:$0xff] }
  0xee   : > { %1783 = vmatpush3.bf16.msra.mxu0 %v1780_v26  ;;  %v675_v26 = vld [vmem:[#allocation2 + $0xc] sm:$0xff] }
  0xef   : > { %1785 = vmatprep.subr.bf16.mxu0 %v1784_v31 }
  0xf2   : > { %1787 = vmatpush3.bf16.msra.mxu0 %v1784_v31  ;;  %v1857_v31 = vpack.c.bf16 %v853_v28, %v852_v27 }
  0xf3   : > { %1789 = vmatprep.subr.bf16.mxu0 %v1788_v34 }
  0xf4   : > { %1858 = vmatpush1.bf16.msra.mxu1 %v1857_v31 }
  0xf5   : > { %1859 = vmatprep.subr.bf16.mxu1 %v2253_v30 }
  0xf6   : > { %1791 = vmatpush3.bf16.msra.mxu0 %v1788_v34  ;;  %v855_v34 = vld [vmem:[#allocation9 + $0xb8] sm:$0xff] }
  0xf7   : > { %1793 = vmatprep.subr.bf16.mxu0 %v1792_v37  ;;  %v1860_v38 = vpack.c.bf16 %v855_v34, %v854_v33 }
  0xf9   : > { %1861 = vmatpush1.bf16.msra.mxu1 %v1860_v38 }
  0xfa   : > { %1795 = vmatpush3.bf16.msra.mxu0 %v1792_v37  ;;  %v1182_v37 = vld [vmem:[#allocation9 + $0x1f8] sm:$0xff]  ;;  %1862 = vmatprep.subr.bf16.mxu1 %v2253_v30 }
  0xfb   : > { %1797 = vmatprep.subr.bf16.mxu0 %v1796_v40  ;;  %v1950_v39 = vpack.c.bf16 %v1182_v37, %v1181_v36 }
  0xfd   : > { %1685 = vmatmul.mubr.msk.f32.vlgmr.msra.gmra.mrb[0].mxu0 %vm319_vm4, %v295_v44 }
  0xfe   : > { %1799 = vmatpush3.bf16.msra.mxu0 %v1796_v40  ;;  %1707 = vmatprep.mubr.msk.f32.mxu0 %vm319_vm4, %v482_v47  ;;  %v856_v40 = vld [vmem:[#allocation9 + $0xc0] sm:$0xff]  ;;  %v859_v47 = vld [vmem:[#allocation9 + $0xd8] sm:$0xff] }
  0xff   : > { %1801 = vmatprep.subr.bf16.mxu0 %v1800_v43  ;;  %v1863_v44 = vpack.c.bf16 %v857_v41, %v856_v40  ;;  %v1866_v50 = vpack.c.bf16 %v859_v47, %v858_v46 }
 0x101   : > { %1864 = vmatpush1.bf16.msra.mxu1 %v1863_v44 }
 0x102   : > { %1803 = vmatpush3.bf16.msra.mxu0 %v1800_v43  ;;  %v1184_v43 = vld [vmem:[#allocation9 + $0x208] sm:$0xff]  ;;  %1865 = vmatprep.subr.bf16.mxu1 %v2253_v30 }
 0x103   : > { %1805 = vmatprep.subr.bf16.mxu0 %v1804_v48  ;;  %v1953_v45 = vpack.c.bf16 %v1184_v43, %v1183_v42  ;;  %v827_v42 = vld [vmem:[#allocation9] sm:$0xff]  ;;  %v828_v43 = vld [vmem:[#allocation9 + $0x8] sm:$0xff] }
 0x105   : > { %1867 = vmatpush1.bf16.msra.mxu1 %v1866_v50 }
 0x106   : > { %1807 = vmatpush3.bf16.msra.mxu0 %v1804_v48  ;;  %v1185_v48 = vld [vmem:[#allocation9 + $0x210] sm:$0xff]  ;;  %1868 = vmatprep.subr.bf16.mxu1 %v2253_v30 }
 0x107   : > { %1809 = vmatprep.subr.bf16.mxu0 %v1808_v51 }
 0x109   : > { %1870 = vmatpush1.bf16.msra.mxu1 %v1869_v56  ;;  %v1887_v56 = vpack.c.bf16 %v828_v43, %v827_v42 }
 0x10a   : > { %1811 = vmatpush3.bf16.msra.mxu0 %v1808_v51  ;;  %v1956_v51 = vpack.c.bf16 %v1186_v49, %v1185_v48  ;;  %1871 = vmatprep.subr.bf16.mxu1 %v2253_v30 }
 0x10b   : > { %1813 = vmatprep.subr.bf16.mxu0 %v1812_v54 }
 0x10d   : > { %1873 = vmatpush1.bf16.msra.mxu1 %v1872_v62 }
 0x10e   : > { %1815 = vmatpush3.bf16.msra.mxu0 %v1812_v54  ;;  %v1187_v54 = vld [vmem:[#allocation9 + $0x220] sm:$0xff]  ;;  %1874 = vmatprep.subr.bf16.mxu1 %v2253_v30 }
 0x10f   : > { %1817 = vmatprep.subr.bf16.mxu0 %v1816_v57 }
 0x111   : > { %1708 = vmatmul.mubr.msk.f32.vlgmr.msra.gmra.mrb[0].mxu0 %vm319_vm4, %v483_v61  ;;  %v1190_v61 = vld [vmem:[#allocation9 + $0x238] sm:$0xff] }
 0x112   : > { %1819 = vmatpush3.bf16.msra.mxu0 %v1816_v57  ;;  %1730 = vmatprep.mubr.msk.f32.mxu0 %vm319_vm4, %v578_v1  ;;  %v1959_v57 = vpack.c.bf16 %v1188_v55, %v1187_v54  ;;  %v864_v1 = vld [vmem:[#allocation9 + $0x100] sm:$0xff] }
 0x113   : > { %1821 = vmatprep.subr.bf16.mxu0 %v1820_v60 }
 0x116   : > { %1823 = vmatpush3.bf16.msra.mxu0 %v1820_v60  ;;  %v1189_v60 = vld [vmem:[#allocation9 + $0x230] sm:$0xff] }
 0x117   : > { %1825 = vmatprep.subr.bf16.mxu0 %v1824_v2  ;;  %v1962_v63 = vpack.c.bf16 %v1190_v61, %v1189_v60 }
 0x11a   : > { %1827 = vmatpush3.bf16.msra.mxu0 %v1824_v2  ;;  %v865_v2 = vld [vmem:[#allocation9 + $0x108] sm:$0xff] }
 0x11b   : > { %1829 = vmatprep.subr.bf16.mxu0 %v1828_v5  ;;  %v1875_v3 = vpack.c.bf16 %v865_v2, %v864_v1  ;;  %v830_v1 = vld [vmem:[#allocation9 + $0x18] sm:$0xff] }
 0x11d   : > { %1876 = vmatpush1.bf16.msra.mxu1 %v1875_v3 }
 0x11e   : > { %1831 = vmatpush3.bf16.msra.mxu0 %v1828_v5  ;;  %v1192_v5 = vld [vmem:[#allocation9 + $0x248] sm:$0xff]  ;;  %1877 = vmatprep.subr.bf16.mxu1 %v2253_v30 }
 0x11f   : > { %1833 = vmatprep.subr.bf16.mxu0 %v1832_v8  ;;  %v1965_v6 = vpack.c.bf16 %v1192_v5, %v1191_v4 }
 0x122   : > { %1835 = vmatpush3.bf16.msra.mxu0 %v1832_v8  ;;  %v867_v8 = vld [vmem:[#allocation9 + $0x118] sm:$0xff] }
 0x123   : > { %1837 = vmatprep.subr.bf16.mxu0 %v1836_v11  ;;  %v1878_v10 = vpack.c.bf16 %v867_v8, %v866_v7  ;;  %v1890_v7 = vpack.c.bf16 %v830_v1, %v829_v58  ;;  %v1066_v58 = vld [vmem:[#allocation9 + $0x190] sm:$0xff] }
 0x124   : > { %v1070_v1 = vld [vmem:[#allocation9 + $0x1b0] sm:$0xff] }
 0x125   : > { %1731 = vmatmul.mubr.msk.f32.vlgmr.msra.gmra.mrb[0].mxu0 %vm319_vm4, %v579_v15  ;;  %v869_v15 = vld [vmem:[#allocation9 + $0x128] sm:$0xff]  ;;  %1879 = vmatpush1.bf16.msra.mxu1 %v1878_v10 }
 0x126   : > { %1839 = vmatpush3.bf16.msra.mxu0 %v1836_v11  ;;  %1753 = vmatprep.mubr.msk.f32.mxu0 %vm319_vm4, %v674_v18  ;;  %v1193_v11 = vld [vmem:[#allocation9 + $0x250] sm:$0xff]  ;;  %v832_v10 = vld [vmem:[#allocation9 + $0x28] sm:$0xff] }
 0x127   : > { %1841 = vmatprep.subr.bf16.mxu0 %v1840_v14  ;;  %v1968_v13 = vpack.c.bf16 %v1194_v12, %v1193_v11  ;;  %1880 = vmatprep.subr.bf16.mxu1 %v2253_v30 }
 0x12a   : > { %1843 = vmatpush3.bf16.msra.mxu0 %v1840_v14  ;;  %v868_v14 = vld [vmem:[#allocation9 + $0x120] sm:$0xff] }
 0x12b   : > { %1845 = vmatprep.subr.bf16.mxu0 %v1844_v19  ;;  %v1881_v18 = vpack.c.bf16 %v869_v15, %v868_v14  ;;  %v833_v15 = vld [vmem:[#allocation9 + $0x30] sm:$0xff] }
 0x12d   : > { %1882 = vmatpush1.bf16.msra.mxu1 %v1881_v18  ;;  %v835_v18 = vld [vmem:[#allocation9 + $0x40] sm:$0xff] }
 0x12e   : > { %1847 = vmatpush3.bf16.msra.mxu0 %v1844_v19  ;;  %v1196_v19 = vld [vmem:[#allocation9 + $0x268] sm:$0xff]  ;;  %1883 = vmatprep.subr.bf16.mxu1 %v2253_v30 }
 0x12f   : > { %1849 = vmatprep.subr.bf16.mxu0 %v1848_v22  ;;  %v1971_v0 = vpack.c.bf16 %v1196_v19, %v1195_v16  ;;  %v834_v16 = vld [vmem:[#allocation9 + $0x38] sm:$0xff]  ;;  %v836_v19 = vld [vmem:[#allocation9 + $0x48] sm:$0xff] }
 0x132   : > { %1851 = vmatpush3.bf16.msra.mxu0 %v1848_v22  ;;  %v870_v22 = vld [vmem:[#allocation9 + $0x130] sm:$0xff] }
 0x133   : > { %1853 = vmatprep.subr.bf16.mxu0 %v1852_v25  ;;  %v1884_v29 = vpack.c.bf16 %v871_v23, %v870_v22  ;;  %v839_v23 = vld [vmem:[#allocation9 + $0x60] sm:$0xff] }
 0x135   : > { %1885 = vmatpush1.bf16.msra.mxu1 %v1884_v29  ;;  %v843_v29 = vld [vmem:[#allocation9 + $0x80] sm:$0xff] }
 0x136   : > { %1855 = vmatpush3.bf16.msra.mxu0 %v1852_v25  ;;  %v1197_v25 = vld [vmem:[#allocation9 + $0x270] sm:$0xff]  ;;  %1886 = vmatprep.subr.bf16.mxu1 %v2253_v30 }
 0x137   : > { %1946 = vmatprep.subr.bf16.mxu0 %v2253_v30 }
 0x139   : > { %1754 = vmatmul.mubr.msk.f32.vlgmr.msra.gmra.mrb[0].mxu0 %vm319_vm4, %v675_v26  ;;  %v1198_v26 = vld [vmem:[#allocation9 + $0x278] sm:$0xff]  ;;  %vm1080_vm4 = vcmask 1045504  }
 0x13a   : > { %1948 = vmatpush1.bf16.msra.mxu0 %v1947_v35  ;;  %v1974_v32 = vpack.c.bf16 %v1198_v26, %v1197_v25  ;;  %v841_v26 = vld [vmem:[#allocation9 + $0x70] sm:$0xff] }
 0x13b   : > { %1949 = vmatprep.subr.bf16.mxu0 %v2253_v30 }
 0x13e   : > { %1951 = vmatpush1.bf16.msra.mxu0 %v1950_v39 }
 0x13f   : > { %1952 = vmatprep.subr.bf16.mxu0 %v2253_v30 }
 0x142   : > { %1954 = vmatpush1.bf16.msra.mxu0 %v1953_v45 }
 0x143   : > { %1955 = vmatprep.subr.bf16.mxu0 %v2253_v30 }
 0x146   : > { %1957 = vmatpush1.bf16.msra.mxu0 %v1956_v51 }
 0x147   : > { %1958 = vmatprep.subr.bf16.mxu0 %v2253_v30 }
 0x14a   : > { %1960 = vmatpush1.bf16.msra.mxu0 %v1959_v57 }
 0x14b   : > { %1961 = vmatprep.subr.bf16.mxu0 %v2253_v30 }
 0x14e   : > { %1963 = vmatpush1.bf16.msra.mxu0 %v1962_v63 }
 0x14f   : > { %1964 = vmatprep.subr.bf16.mxu0 %v2253_v30 }
 0x152   : > { %1966 = vmatpush1.bf16.msra.mxu0 %v1965_v6 }
 0x153   : > { %1967 = vmatprep.subr.bf16.mxu0 %v2253_v30 }
 0x156   : > { %1969 = vmatpush1.bf16.msra.mxu0 %v1968_v13 }
 0x157   : > { %1970 = vmatprep.subr.bf16.mxu0 %v2253_v30 }
 0x15a   : > { %1972 = vmatpush1.bf16.msra.mxu0 %v1971_v0  ;;  %v838_v0 = vld [vmem:[#allocation9 + $0x58] sm:$0xff] }
 0x15b   : > { %1973 = vmatprep.subr.bf16.mxu0 %v2253_v30 }
 0x15e   : > { %1975 = vmatpush1.bf16.msra.mxu0 %v1974_v32 }
 0x20c   : > { %v1755_v17 = vpop.f32.mrb[0].mxu0 }
 0x20d   : > { %v778_v20 = vadd.f32 %v1755_v17, %v1562_v9  ;;  %v759_v21 = vpop.f32.mrb[1].mxu0  ;;  %v1896_v17 = vpack.c.bf16 %v834_v16, %v833_v15 }
 0x20e   : > { %v777_v24 = vadd.f32 %v1562_v9, %v759_v21  ;;  %v831_v9 = vld [vmem:[#allocation9 + $0x20] sm:$0xff]  ;;  %v837_v21 = vld [vmem:[#allocation9 + $0x50] sm:$0xff] }
 0x20f   : > { %v780_v27 = vmax.f32 %v778_v20, 0.0  ;;  %v1893_v14 = vpack.c.bf16 %v832_v10, %v831_v9  ;;  %v1899_v20 = vpack.c.bf16 %v836_v19, %v835_v18  ;;  %v1902_v22 = vpack.c.bf16 %v838_v0, %v837_v21  ;;  %v1304_v19 = vld [vmem:[#allocation9 + $0x290] sm:$0xff] }
 0x210   : > { %v779_v28 = vmax.f32 %v777_v24, 0.0  ;;  %v840_v24 = vld [vmem:[#allocation9 + $0x68] sm:$0xff] }
 0x211   : > { %v803_v31 = vrot.slane %v780_v27, 6  ;;  %v1905_v25 = vpack.c.bf16 %v840_v24, %v839_v23  ;;  %v842_v27 = vld [vmem:[#allocation9 + $0x78] sm:$0xff] }
 0x212   : > { %v802_v33 = vrot.slane %v779_v28, 6  ;;  %v1908_v28 = vpack.c.bf16 %v842_v27, %v841_v26  ;;  %v1306_v27 = vld [vmem:[#allocation9 + $0x2a0] sm:$0xff] }
 0x213   : > { %809 = vrot.lane.b32.xlu0 %v803_v31, %s2254_s16 }
 0x214   : > { %805 = vrot.lane.b32.xlu1 %v802_v33, %s2254_s16  ;;  %v804_v34 = vsel %vm801_vm13, %v802_v33, %v803_v31  ;;  %v844_v31 = vld [vmem:[#allocation9 + $0x88] sm:$0xff]  ;;  %v845_v33 = vld [vmem:[#allocation9 + $0x90] sm:$0xff] }
 0x215   : > { %v1911_v32 = vpack.c.bf16 %v844_v31, %v843_v29 }
 0x218   : > { %807 = vrot.lane.b32.xlu1 %v804_v34, %s2254_s16  ;;  %v846_v34 = vld [vmem:[#allocation9 + $0x98] sm:$0xff] }
 0x285   : > { %v810_v35 = vpop.permute.xlu0 %809 }
 0x286   : > { %821 = vst.msk [vmem:[#allocation3 + $0x20] sm:$0x3] %vm820_vm14, %v810_v35  ;;  %v806_v36 = vpop.permute.xlu1 %805 }
 0x287   : > { %822 = vst.msk [vmem:[#allocation3 + $0x28] sm:$0x3] %vm791_vm5, %v810_v35  ;;  %v1914_v35 = vpack.c.bf16 %v846_v34, %v845_v33  ;;  %vm1326_vm5 = vcmask 1043456   ;;  %v1309_v33 = vld [vmem:[#allocation9 + $0x2b8] sm:$0xff] }
 0x288   : > { %815 = vst.msk [vmem:[#allocation3] sm:$0xfc] %vm814_vm15, %v806_v36 }
 0x289   : > { %816 = vst.msk [vmem:[#allocation3 + $0x8] sm:$0xfc] %vm787_vm7, %v806_v36  ;;  %v1056_v36 = vld [vmem:[#allocation9 + $0x140] sm:$0xff] }
 0x28a   : > { %v808_v37 = vpop.permute.xlu1 %807 }
 0x28b   : > { %818 = vst.msk [vmem:[#allocation3 + $0x10] sm:$0xff] %vm817_vm0, %v808_v37 }
 0x28c   : > { %819 = vst.msk [vmem:[#allocation3 + $0x18] sm:$0xff] %vm789_vm9, %v808_v37  ;;  %v1057_v37 = vld [vmem:[#allocation9 + $0x148] sm:$0xff] }
 0x28d   : > { %v849_v63 = vld [vmem:[#allocation3 + $0x20] sm:$0x1] }
 0x28e   : > { %v850_v44 = vld [vmem:[#allocation3 + $0x28] sm:$0x1]  ;;  %v1176_v2 = vld [vmem:[#allocation3 + $0x20] sm:$0x7]  ;;  %v885_v6 = vrot.slane %v849_v63, 1 }
 0x28f   : > { %v847_v40 = vld [vmem:[#allocation3] sm:$0xfe]  ;;  %v1177_v55 = vld [vmem:[#allocation3 + $0x28] sm:$0x7]  ;;  %v887_v57 = vrot.slane %v850_v44, 1  ;;  %v1210_v8 = vrot.slane %v1176_v2, 3 }
 0x290   : > { %v848_v38 = vld [vmem:[#allocation3 + $0x8] sm:$0xfe]  ;;  %v1174_v41 = vld [vmem:[#allocation3] sm:$0xf8]  ;;  %v879_v49 = vrot.slane %v847_v40, 1  ;;  %v1212_v3 = vrot.slane %v1177_v55, 3 }
 0x291   : > { %v1175_v39 = vld [vmem:[#allocation3 + $0x8] sm:$0xf8]  ;;  %v882_v46 = vrot.slane %v848_v38, 1  ;;  %v1204_v50 = vrot.slane %v1174_v41, 3  ;;  %v1917_v38 = vpack.c.bf16 %v1057_v37, %v1056_v36  ;;  %v1059_v40 = vld [vmem:[#allocation9 + $0x158] sm:$0xff]  ;;  %v823_v41 = vld [vmem:[#allocation3] sm:$0xff] }
 0x292   : > { %v1207_v47 = vrot.slane %v1175_v39, 3  ;;  %v2542_v48 = vld [vmem:[#allocation3 + $0x10] sm:$0xff]  ;;  %v824_v13 = vld [vmem:[#allocation3 + $0x8] sm:$0xff]  ;;  %v1064_v55 = vld [vmem:[#allocation9 + $0x180] sm:$0xff] }
 0x293   : > { %v2540_v45 = vld [vmem:[#allocation3 + $0x18] sm:$0xff]  ;;  %v880_v53 = vrot.slane %v2542_v48, 1  ;;  %v1205_v54 = vrot.slane %v2542_v48, 3  ;;  %v1058_v39 = vld [vmem:[#allocation9 + $0x150] sm:$0xff]  ;;  %v1052_v42 = vld [vmem:[#allocation3 + $0x8] sm:$0xfc] }
 0x294   : > { %v883_v51 = vrot.slane %v2540_v45, 1  ;;  %v1208_v52 = vrot.slane %v2540_v45, 3  ;;  %v1085_v43 = vrot.slane %v2540_v45, 2  ;;  %v1920_v44 = vpack.c.bf16 %v1059_v40, %v1058_v39  ;;  %v1071_v2 = vld [vmem:[#allocation9 + $0x1b8] sm:$0xff]  ;;  %v1051_v10 = vld [vmem:[#allocation3] sm:$0xfc] }
 0x295   : > { %v881_v61 = vsel %vm878_vm1, %v879_v49, %v880_v53  ;;  %v1206_v62 = vsel %vm1203_vm3, %v1204_v50, %v1205_v54  ;;  %v886_v11 = vsel %vm878_vm1, %v880_v53, %v885_v6  ;;  %v1211_v12 = vsel %vm1203_vm3, %v1205_v54, %v1210_v8  ;;  %v1061_v49 = vld [vmem:[#allocation9 + $0x168] sm:$0xff]  ;;  %v1063_v53 = vld [vmem:[#allocation9 + $0x178] sm:$0xff]  ;;  %v1053_v18 = vld [vmem:[#allocation3 + $0x20] sm:$0x3] }
 0x296   : > { %v884_v59 = vsel %vm878_vm1, %v882_v46, %v883_v51  ;;  %v1209_v60 = vsel %vm1203_vm3, %v1207_v47, %v1208_v52  ;;  %v888_v4 = vsel %vm878_vm1, %v883_v51, %v887_v57  ;;  %v1213_v5 = vsel %vm1203_vm3, %v1208_v52, %v1212_v3  ;;  %v1060_v47 = vld [vmem:[#allocation9 + $0x160] sm:$0xff]  ;;  %v1062_v52 = vld [vmem:[#allocation9 + $0x170] sm:$0xff]  ;;  %v1075_v8 = vld [vmem:[#allocation9 + $0x1d8] sm:$0xff] }
 0x297   : > { %1563 = vmatprep.mubr.msk.f32.mxu1 %vm891_vm2, %v884_v59  ;;  %1569 = vmatprep.mubr.msk.f32.mxu0 %vm891_vm2, %v1209_v60  ;;  %v1084_v46 = vrot.slane %v1052_v42, 2  ;;  %v1923_v51 = vpack.c.bf16 %v1061_v49, %v1060_v47  ;;  %v1926_v54 = vpack.c.bf16 %v1063_v53, %v1062_v52  ;;  %v1067_v59 = vld [vmem:[#allocation9 + $0x198] sm:$0xff]  ;;  %v1938_v3 = vpack.c.bf16 %v1071_v2, %v1070_v1  ;;  %v1298_v0 = vld [vmem:[#allocation3 + $0x8] sm:$0xf0]  ;;  %v1318_v49 = vld [vmem:[#allocation9 + $0x300] sm:$0xff] }
 0x298   : > { %961 = vmatmul.mubr.f32.vlgmr.msra.gmra.mrb[0].mxu1 %v881_v61  ;;  %1285 = vmatmul.mubr.f32.vlgmr.msra.gmra.mrb[2].mxu0 %v1206_v62  ;;  %v1932_v60 = vpack.c.bf16 %v1067_v59, %v1066_v58  ;;  %v1068_v61 = vld [vmem:[#allocation9 + $0x1a0] sm:$0xff]  ;;  %v1069_v62 = vld [vmem:[#allocation9 + $0x1a8] sm:$0xff]  ;;  %v1081_v15 = vrot.slane %v1051_v10, 2  ;;  %v1331_v23 = vrot.slane %v2540_v45, 4  ;;  %v1087_v24 = vrot.slane %v1053_v18, 2  ;;  %v1313_v39 = vld [vmem:[#allocation9 + $0x2d8] sm:$0xff] }
 0x299   : > { %1888 = vmatpush1.bf16.msra.mxu1 %v1887_v56  ;;  %1564 = vmatprep.mubr.msk.f32.mxu1 %vm891_vm2, %v888_v4  ;;  %v1086_v50 = vsel %vm1080_vm4, %v1084_v46, %v1085_v43  ;;  %v1065_v56 = vld [vmem:[#allocation9 + $0x188] sm:$0xff]  ;;  %v1935_v63 = vpack.c.bf16 %v1069_v62, %v1068_v61  ;;  %v1072_v4 = vld [vmem:[#allocation9 + $0x1c0] sm:$0xff]  ;;  %v1330_v26 = vrot.slane %v1298_v0, 4  ;;  %v1317_v46 = vld [vmem:[#allocation9 + $0x2f8] sm:$0xff] }
 0x29a   : > { %1570 = vmatprep.mubr.msk.f32.mxu0 %vm891_vm2, %v1213_v5  ;;  %1889 = vmatprep.subr.bf16.mxu1 %v2253_v30  ;;  %v1929_v57 = vpack.c.bf16 %v1065_v56, %v1064_v55  ;;  %v1073_v5 = vld [vmem:[#allocation9 + $0x1c8] sm:$0xff]  ;;  %v1320_v52 = vld [vmem:[#allocation9 + $0x310] sm:$0xff]  ;;  %v1321_v53 = vld [vmem:[#allocation9 + $0x318] sm:$0xff]  ;;  %v1328_v56 = vrot.slane %v2542_v48, 4 }
 0x29b   : > { %v1941_v6 = vpack.c.bf16 %v1073_v5, %v1072_v4  ;;  %v1332_v31 = vsel %vm1326_vm5, %v1330_v26, %v1331_v23  ;;  %v1311_v36 = vld [vmem:[#allocation9 + $0x2c8] sm:$0xff]  ;;  %v1297_v55 = vld [vmem:[#allocation3] sm:$0xf0] }
 0x29c   : > { %966 = vmatmul.mubr.f32.gmra.mrb[2].mxu1 %v886_v11  ;;  %1290 = vmatmul.mubr.f32.gmra.mrb[4].mxu0 %v1211_v12  ;;  %v1302_v11 = vld [vmem:[#allocation9 + $0x280] sm:$0xff]  ;;  %v1303_v12 = vld [vmem:[#allocation9 + $0x288] sm:$0xff]  ;;  %v1327_v58 = vrot.slane %v1297_v55, 4 }
 0x29d   : > { %1891 = vmatpush1.bf16.msra.mxu1 %v1890_v7  ;;  %1565 = vmatprep.mubr.msk.f32.mxu1 %vm891_vm2, %v824_v13  ;;  %v1074_v7 = vld [vmem:[#allocation9 + $0x1d0] sm:$0xff]  ;;  %v1082_v13 = vrot.slane %v2542_v48, 2  ;;  %v1977_v16 = vpack.c.bf16 %v1303_v12, %v1302_v11  ;;  %v1315_v42 = vld [vmem:[#allocation9 + $0x2e8] sm:$0xff] }
 0x29e   : > { %1892 = vmatprep.subr.bf16.mxu1 %v2253_v30  ;;  %v1944_v9 = vpack.c.bf16 %v1075_v8, %v1074_v7  ;;  %v1329_v61 = vsel %vm1326_vm5, %v1327_v58, %v1328_v56 }
 0x29f   : > { %v1083_v21 = vsel %vm1080_vm4, %v1081_v15, %v1082_v13  ;;  %v1088_v29 = vsel %vm1080_vm4, %v1082_v13, %v1087_v24 }
 0x2a1   : > { %1894 = vmatpush1.bf16.msra.mxu1 %v1893_v14  ;;  %v1054_v14 = vld [vmem:[#allocation3 + $0x28] sm:$0x3] }
 0x2a2   : > { %1895 = vmatprep.subr.bf16.mxu1 %v2253_v30 }
 0x2a5   : > { %1897 = vmatpush1.bf16.msra.mxu1 %v1896_v17  ;;  %v1089_v17 = vrot.slane %v1054_v14, 2 }
 0x2a6   : > { %1898 = vmatprep.subr.bf16.mxu1 %v2253_v30 }
 0x2a9   : > { %1900 = vmatpush1.bf16.msra.mxu1 %v1899_v20  ;;  %v1305_v20 = vld [vmem:[#allocation9 + $0x298] sm:$0xff] }
 0x2aa   : > { %1901 = vmatprep.subr.bf16.mxu1 %v2253_v30 }
 0x2ad   : > { %1903 = vmatpush1.bf16.msra.mxu1 %v1902_v22  ;;  %v1090_v22 = vsel %vm1080_vm4, %v1085_v43, %v1089_v17 }
 0x2ae   : > { %1904 = vmatprep.subr.bf16.mxu1 %v2253_v30 }
 0x2b1   : > { %1906 = vmatpush1.bf16.msra.mxu1 %v1905_v25  ;;  %v1980_v25 = vpack.c.bf16 %v1305_v20, %v1304_v19 }
 0x2b2   : > { %1907 = vmatprep.subr.bf16.mxu1 %v2253_v30 }
 0x2b5   : > { %1909 = vmatpush1.bf16.msra.mxu1 %v1908_v28  ;;  %v1307_v28 = vld [vmem:[#allocation9 + $0x2a8] sm:$0xff] }
 0x2b6   : > { %1910 = vmatprep.subr.bf16.mxu1 %v2253_v30 }
 0x2b9   : > { %1912 = vmatpush1.bf16.msra.mxu1 %v1911_v32  ;;  %v1308_v32 = vld [vmem:[#allocation9 + $0x2b0] sm:$0xff] }
 0x2ba   : > { %1913 = vmatprep.subr.bf16.mxu1 %v2253_v30  ;;  %v1986_v34 = vpack.c.bf16 %v1309_v33, %v1308_v32 }
 0x2bd   : > { %1915 = vmatpush1.bf16.msra.mxu1 %v1914_v35  ;;  %v1310_v35 = vld [vmem:[#allocation9 + $0x2c0] sm:$0xff] }
 0x2be   : > { %1916 = vmatprep.subr.bf16.mxu1 %v2253_v30  ;;  %v1989_v37 = vpack.c.bf16 %v1311_v36, %v1310_v35 }
 0x2c0   : > { %1041 = vmatmul.mubr.f32.vlgmr.msra.gmra.mrb[4].mxu1 %v823_v41  ;;  %v1314_v41 = vld [vmem:[#allocation9 + $0x2e0] sm:$0xff] }
 0x2c1   : > { %1566 = vmatprep.mubr.msk.f32.mxu1 %vm891_vm2, %v2540_v45  ;;  %1918 = vmatpush1.bf16.msra.mxu1 %v1917_v38  ;;  %v1983_v45 = vpack.c.bf16 %v1307_v28, %v1306_v27  ;;  %v1312_v38 = vld [vmem:[#allocation9 + $0x2d0] sm:$0xff]  ;;  %v1995_v43 = vpack.c.bf16 %v1315_v42, %v1314_v41 }
 0x2c2   : > { %1919 = vmatprep.subr.bf16.mxu1 %v2253_v30  ;;  %v1992_v40 = vpack.c.bf16 %v1313_v39, %v1312_v38 }
 0x2c4   : > { %1046 = vmatmul.mubr.f32.gmra.mrb[6].mxu1 %v2542_v48 }
 0x2c5   : > { %1921 = vmatpush1.bf16.msra.mxu1 %v1920_v44  ;;  %1567 = vmatprep.mubr.msk.f32.mxu1 %vm891_vm2, %v1086_v50  ;;  %v1316_v44 = vld [vmem:[#allocation9 + $0x2f0] sm:$0xff]  ;;  %v1319_v50 = vld [vmem:[#allocation9 + $0x308] sm:$0xff] }
 0x2c6   : > { %1922 = vmatprep.subr.bf16.mxu1 %v2253_v30  ;;  %v1998_v47 = vpack.c.bf16 %v1317_v46, %v1316_v44 }
 0x2c9   : > { %1924 = vmatpush1.bf16.msra.mxu1 %v1923_v51  ;;  %v2001_v51 = vpack.c.bf16 %v1319_v50, %v1318_v49 }
 0x2ca   : > { %1925 = vmatprep.subr.bf16.mxu1 %v2253_v30 }
 0x2cd   : > { %1927 = vmatpush1.bf16.msra.mxu1 %v1926_v54  ;;  %v2004_v54 = vpack.c.bf16 %v1321_v53, %v1320_v52 }
 0x2ce   : > { %1928 = vmatprep.subr.bf16.mxu1 %v2253_v30 }
 0x2d1   : > { %1930 = vmatpush1.bf16.msra.mxu1 %v1929_v57  ;;  %v1300_v57 = vld [vmem:[#allocation3 + $0x28] sm:$0xf] }
 0x2d2   : > { %1931 = vmatprep.subr.bf16.mxu1 %v2253_v30  ;;  %v1335_v59 = vrot.slane %v1300_v57, 4 }
 0x2d4   : > { %v1336_v62 = vsel %vm1326_vm5, %v1331_v23, %v1335_v59 }
 0x2d5   : > { %1933 = vmatpush1.bf16.msra.mxu1 %v1932_v60  ;;  %v1299_v60 = vld [vmem:[#allocation3 + $0x20] sm:$0xf] }
 0x2d6   : > { %1934 = vmatprep.subr.bf16.mxu1 %v2253_v30 }
 0x2d9   : > { %1936 = vmatpush1.bf16.msra.mxu1 %v1935_v63  ;;  %v1333_v63 = vrot.slane %v1299_v60, 4 }
 0x2da   : > { %1937 = vmatprep.subr.bf16.mxu1 %v2253_v30 }
 0x2db   : > { %v1334_v1 = vsel %vm1326_vm5, %v1328_v56, %v1333_v63 }
 0x2dd   : > { %1939 = vmatpush1.bf16.msra.mxu1 %v1938_v3 }
 0x2de   : > { %1940 = vmatprep.subr.bf16.mxu1 %v2253_v30 }
 0x2e1   : > { %1942 = vmatpush1.bf16.msra.mxu1 %v1941_v6 }
 0x2e2   : > { %1943 = vmatprep.subr.bf16.mxu1 %v2253_v30 }
 0x2e5   : > { %1945 = vmatpush1.bf16.msra.mxu1 %v1944_v9 }
 0x2e6   : > { %1976 = vmatprep.subr.bf16.mxu1 %v2253_v30 }
 0x2e8   : > { %1162 = vmatmul.mubr.f32.vlgmr.msra.gmra.mrb[8].mxu1 %v1083_v21 }
 0x2e9   : > { %1568 = vmatprep.mubr.msk.f32.mxu1 %vm891_vm2, %v1090_v22  ;;  %1978 = vmatpush1.bf16.msra.mxu1 %v1977_v16  ;;  %v1573_v22 = vld [vmem:[%s2673_s4] ss:$0 sm:$0xff] }
 0x2ea   : > { %1979 = vmatprep.subr.bf16.mxu1 %v2253_v30 }
 0x2ec   : > { %1167 = vmatmul.mubr.f32.gmra.mrb[10].mxu1 %v1088_v29 }
 0x2ed   : > { %1981 = vmatpush1.bf16.msra.mxu1 %v1980_v25  ;;  %1571 = vmatprep.mubr.msk.f32.mxu1 %vm891_vm2, %v1332_v31 }
 0x2ee   : > { %1982 = vmatprep.subr.bf16.mxu1 %v2253_v30 }
 0x2f1   : > { %1984 = vmatpush1.bf16.msra.mxu1 %v1983_v45 }
 0x2f2   : > { %1985 = vmatprep.subr.bf16.mxu1 %v2253_v30 }
 0x2f5   : > { %1987 = vmatpush1.bf16.msra.mxu1 %v1986_v34 }
 0x2f6   : > { %1988 = vmatprep.subr.bf16.mxu1 %v2253_v30 }
 0x2f9   : > { %1990 = vmatpush1.bf16.msra.mxu1 %v1989_v37 }
 0x2fa   : > { %1991 = vmatprep.subr.bf16.mxu1 %v2253_v30 }
 0x2fd   : > { %1993 = vmatpush1.bf16.msra.mxu1 %v1992_v40 }
 0x2fe   : > { %1994 = vmatprep.subr.bf16.mxu1 %v2253_v30 }
 0x301   : > { %1996 = vmatpush1.bf16.msra.mxu1 %v1995_v43 }
 0x302   : > { %1997 = vmatprep.subr.bf16.mxu1 %v2253_v30 }
 0x305   : > { %1999 = vmatpush1.bf16.msra.mxu1 %v1998_v47 }
 0x306   : > { %2000 = vmatprep.subr.bf16.mxu1 %v2253_v30 }
 0x309   : > { %2002 = vmatpush1.bf16.msra.mxu1 %v2001_v51 }
 0x30a   : > { %2003 = vmatprep.subr.bf16.mxu1 %v2253_v30 }
 0x30d   : > { %2005 = vmatpush1.bf16.msra.mxu1 %v2004_v54 }
 0x310   : > { %1408 = vmatmul.mubr.f32.vlgmr.msra.gmra.mrb[12].mxu1 %v1329_v61 }
 0x311   : > { %1572 = vmatprep.mubr.msk.f32.mxu1 %vm891_vm2, %v1336_v62 }
 0x314   : > { %1413 = vmatmul.mubr.f32.gmra.mrb[14].mxu1 %v1334_v1 }
 0x36b   : > { %v962_v30 = vpop.f32.mrb[0].mxu1  ;;  %v1286_v2 = vpop.f32.mrb[2].mxu0 }
 0x36c   : > { %v964_v3 = vpop.f32.mrb[1].mxu1  ;;  %v1288_v48 = vpop.f32.mrb[3].mxu0 }
 0x36f   : > { %v967_v4 = vpop.f32.mrb[2].mxu1  ;;  %v1291_v5 = vpop.f32.mrb[4].mxu0 }
 0x370   : > { %v969_v6 = vpop.f32.mrb[3].mxu1  ;;  %v1293_v7 = vpop.f32.mrb[5].mxu0 }
 0x393   : > { %v1042_v8 = vpop.f32.mrb[4].mxu1 }
 0x394   : > { %v1043_v9 = vadd.f32 %v1042_v8, %v962_v30  ;;  %v1044_v10 = vpop.f32.mrb[5].mxu1 }
 0x397   : > { %v1047_v11 = vpop.f32.mrb[6].mxu1 }
 0x398   : > { %v1048_v12 = vadd.f32 %v1047_v11, %v967_v4  ;;  %v1049_v13 = vpop.f32.mrb[7].mxu1 }
 0x3bb   : > { %v1163_v14 = vpop.f32.mrb[8].mxu1 }
 0x3bc   : > { %v1172_v15 = vadd.f32 %v1163_v14, %v1043_v9  ;;  %v1165_v16 = vpop.f32.mrb[9].mxu1 }
 0x3be   : > { %v1295_v17 = vadd.f32 %v1286_v2, %v1172_v15 }
 0x3bf   : > { %v1168_v18 = vpop.f32.mrb[10].mxu1 }
 0x3c0   : > { %v1173_v19 = vadd.f32 %v1168_v18, %v1048_v12  ;;  %v1170_v20 = vpop.f32.mrb[11].mxu1 }
 0x3c2   : > { %v1296_v21 = vadd.f32 %v1291_v5, %v1173_v19 }
 0x3e3   : > { %v1409_v0 = vpop.f32.mrb[12].mxu1 }
 0x3e4   : > { %v1418_v23 = vadd.f32 %v1409_v0, %v1295_v17  ;;  %v1411_v24 = vpop.f32.mrb[13].mxu1 }
 0x3e6   : > { %v1427_v25 = vadd.f32 %v1573_v22, %v1418_v23 }
 0x3e7   : > { %v1414_v26 = vpop.f32.mrb[14].mxu1 }
 0x3e8   : > { %v1429_v27 = vmax.f32 %v1427_v25, 0.0  ;;  %v1419_v28 = vadd.f32 %v1414_v26, %v1296_v21  ;;  %v1416_v29 = vpop.f32.mrb[15].mxu1 }
 0x3ea   : > { %1431 = vst [vmem:[%s271_s13] sm:$0xff] %v1429_v27  ;;  %v1428_v31 = vadd.f32 %v1573_v22, %v1419_v28 }
 0x3ec   : > { %v1430_v45 = vmax.f32 %v1428_v31, 0.0 }
 0x3ee   : > { %1432 = vst [vmem:[%s271_s13 + $0x8] sm:$0xff] %v1430_v45 }
 0x3ef   : > { %2187 = shalt.err (!%p2184_p1)
}
 0x3f0   : > { %s2188_s15 = scalar_lea.hbm %s2624_s7, 256  ;;  %s2192_s28 = scalar_lea.hbm %s2674_s5, 512 }
 0x3f1   : > { %p2189_p13 = scmp.ne.s32.totalorder %s2624_s7, %s2188_s15  ;;  %p2193_p4 = scmp.lt.u32.totalorder %s2624_s7, %s2674_s5 }
 0x3f2   : > { %p2194_p5 = scmp.lt.u32.totalorder %s2192_s28, %s2188_s15  ;;  %p2196_p11 = scmp.lt.u32.totalorder %s2188_s15, %s2624_s7 }
 0x3f3   : > { %p2190_p6 = pnand %p2189_p13, %p2688_p0 }
 0x3f4   : > { %p2195_p8 = por %p2194_p5, %p2193_p4 }
 0x3f5   : > { %p2191_p10 = pneg %p2190_p6 }
 0x3f6   : > { %p2197_p2 = por %p2196_p11, %p2195_p8 }
 0x3f8   : > { %p2198_p3 = pnand %p2197_p2, %p2191_p10 }
 0x3fa   : > { %2201 = shalt.err (!%p2198_p3)
}
 0x3fb   : > { %s2256_s11 = smov 128  }
 0x3fc   : > { %2024 = dma.vmem_to_hbm [thread:$0]  (%p2688_p0), %s2619_s9, 256, %s2624_s7, %s1434_s8, %s2256_s11, %s2256_s11, %s2252_s24  }
 0x3fd PF: > { %s1462_s17 = sand.u32 1, %s2232_s18   ;;  %p2689_p7 = scmp.ne.s32.totalorder %s2679_s25, 0 }
 0x3fe   : > { %p2690_p9 = scmp.ge.s32.totalorder %s2244_s21, 2  ;;  %s1463_s6 = scalar_lea.sflag [#allocation6], %s1462_s17 }
 0x400   : > { %p2038_p12 = pnand %p2690_p9, %p2689_p7 }
 0x402   : > { %2227 = dma.done.wait (!%p2038_p12), %s1463_s6, 256  }
 0x403   : > { %2229 = vsyncadd (!%p2038_p12), %s1463_s6, 4294967040  ;;  %p19_p1 = scmp.ge.s32.totalorder %s2403_s29, 4   ;;  %s2691_s18 = smov %s2236_s19 }
 0x404   : > { %s2692_s19 = smov %s2240_s20  ;;  %s2693_s20 = smov %s2419_s27 }
 0x405   : > { %s2694_s21 = smov %s2403_s29  ;;  %21 = sbr.rel (!%p19_p1) target bundleno = 6 (0x6), region = 101 }
 0x40c   :  { %1468 = vsyncpa [#allocation5], 1 }
 0x40d   :  { %1470 = vsyncpa [#allocation5 + $0x1], 1 }
 0x40e   :  { %1471 = vsyncpa [#allocation8], 1 }
 0x40f   :  { %1472 = vsyncpa [#allocation6], 1 }
 0x410   :  { %1474 = vsyncpa [#allocation6 + $0x1], 1 }

</bundles_post_ra>
